<compile_context>
chip_gen: v7x
topology: tpu7x:2x2x1
jax: 0.10.0
libtpu: 0.0.40
codegen_flags: <defaults>
</compile_context>

<pallas_src>
import jax
import jax.numpy as jnp
from jax import lax
from jax.experimental import pallas as pl
from jax.experimental.pallas import tpu as pltpu

# problem sizes (small, consistent with the module's forward)
VOCAB = 64          # vocab_size
INPUT_SIZE = 16     # input_size (embedding dim)
HIDDEN = 32         # hidden_size
NUM_LAYERS = 2      # num_layers
BATCH = 4           # N
MAX_LEN = 8         # max_L (sequence length)


def encoder_lstm_kernel(tok_ref, emb_ref, wih0_ref, wihr_ref, whh_ref, bias_ref,
                        out_ref, gi0_scr):
    H, N, L, NL, V = HIDDEN, BATCH, MAX_LEN, NUM_LAYERS, VOCAB

    # ---- step-invariant precompute (hoisted out of the time loop) ----
    # Embedding lookup for the whole sequence as one-hot @ table (MXU), then
    # layer-0 input-gate pre-activations for every step in one fused matmul:
    #   gi0[t*N + n, :] = emb(x[n, t]) @ W_ih_l0^T + (b_ih_l0 + b_hh_l0)
    vocab_iota = jax.lax.broadcasted_iota(jnp.int32, (L * N, V), 1)
    onehot = (vocab_iota == tok_ref[...]).astype(jnp.float32)           # (L*N, V)
    emb_all = jnp.dot(onehot, emb_ref[...],
                      preferred_element_type=jnp.float32)               # (L*N, I)
    gi0_all = jnp.dot(emb_all, wih0_ref[...],
                      preferred_element_type=jnp.float32) + bias_ref[0]  # (L*N, 4H)
    # static re-layout (L*N, 4H) -> (L, N, 4H) so the loop indexes the leading axis
    for t in range(L):
        gi0_scr[t] = gi0_all[t * N:(t + 1) * N, :]

    def lstm_gates(gates, c_prev):
        # PyTorch LSTM gate order along the fused 4H axis: [i, f, g, o]
        i_g = jax.nn.sigmoid(gates[:, 0 * H:1 * H])
        f_g = jax.nn.sigmoid(gates[:, 1 * H:2 * H])
        g_g = jnp.tanh(gates[:, 2 * H:3 * H])
        o_g = jax.nn.sigmoid(gates[:, 3 * H:4 * H])
        c_new = f_g * c_prev + i_g * g_g
        h_new = o_g * jnp.tanh(c_new)
        return h_new, c_new

    def step(t, carry):
        h, c = carry                                    # tuples of (N, H) per layer
        # layer 0: input gates precomputed; one fused (N,H)x(H,4H) hidden matmul
        g0 = gi0_scr[t] + jnp.dot(h[0], whh_ref[0],
                                  preferred_element_type=jnp.float32)
        h0_new, c0_new = lstm_gates(g0, c[0])
        new_h, new_c = [h0_new], [c0_new]
        x = h0_new
        for l in range(1, NL):                          # upper layers
            g = (jnp.dot(x, wihr_ref[l - 1], preferred_element_type=jnp.float32)
                 + jnp.dot(h[l], whh_ref[l], preferred_element_type=jnp.float32)
                 + bias_ref[l])
            hl_new, cl_new = lstm_gates(g, c[l])
            new_h.append(hl_new)
            new_c.append(cl_new)
            x = hl_new
        out_ref[t] = x                                  # last-layer hidden at step t
        return tuple(new_h), tuple(new_c)

    # zero initial (h, c) — PyTorch default when state_cell is None
    zeros = tuple(jnp.zeros((N, H), jnp.float32) for _ in range(NL))
    lax.fori_loop(0, L, step, (zeros, zeros), unroll=True)


def init_torch_style_params(key):
    """Deterministic params with PyTorch-convention shapes."""
    V, I, H = VOCAB, INPUT_SIZE, HIDDEN
    bound = 1.0 / (H ** 0.5)
    keys = jax.random.split(key, 1 + 4 * NUM_LAYERS)
    u = lambda kk, shape: jax.random.uniform(kk, shape, jnp.float32, -bound, bound)
    params = {'emb': jax.random.normal(keys[0], (V, I), jnp.float32)}
    idx = 1
    for l in range(NUM_LAYERS):
        in_dim = I if l == 0 else H
        params[f'w_ih_l{l}'] = u(keys[idx], (4 * H, in_dim)); idx += 1
        params[f'w_hh_l{l}'] = u(keys[idx], (4 * H, H)); idx += 1
        params[f'b_ih_l{l}'] = u(keys[idx], (4 * H,)); idx += 1
        params[f'b_hh_l{l}'] = u(keys[idx], (4 * H,)); idx += 1
    return params


def _prep_kernel_params(p):
    """Re-layout PyTorch-shaped params into a few packed, matmul-ready blobs."""
    H = HIDDEN
    bias = jnp.stack(
        [(p[f'b_ih_l{l}'] + p[f'b_hh_l{l}']).reshape(1, 4 * H)
         for l in range(NUM_LAYERS)], axis=0)                      # (NL, 1, 4H)
    return dict(
        emb=p['emb'],                                              # (V, I)
        wih0=p['w_ih_l0'].T,                                       # (I, 4H)
        wih_rest=jnp.stack([p[f'w_ih_l{l}'].T
                            for l in range(1, NUM_LAYERS)], 0),    # (NL-1, H, 4H)
        whh=jnp.stack([p[f'w_hh_l{l}'].T
                       for l in range(NUM_LAYERS)], 0),            # (NL, H, 4H)
        bias=bias,
    )


def encoder_lstm_forward(x_tokens, params):
    """Equivalent of EncoderLSTM.forward(x, state_cell=None)."""
    N, L = x_tokens.shape
    kp = _prep_kernel_params(params)
    # time-major flat token ids as a column so the kernel builds one-hots itself
    tok = x_tokens.T.reshape(L * N, 1).astype(jnp.int32)

    in_arrays = [tok, kp['emb'], kp['wih0'], kp['wih_rest'], kp['whh'], kp['bias']]

    def full_spec(shape):
        nd = len(shape)
        return pl.BlockSpec(shape, lambda i, _nd=nd: (0,) * _nd)

    out = pl.pallas_call(
        encoder_lstm_kernel,
        out_shape=jax.ShapeDtypeStruct((L, N, HIDDEN), jnp.float32),
        grid_spec=pltpu.PrefetchScalarGridSpec(
            num_scalar_prefetch=0,
            grid=(1,),                                   # whole decode in one step
            in_specs=[full_spec(a.shape) for a in in_arrays],
            out_specs=full_spec((L, N, HIDDEN)),
            scratch_shapes=[pltpu.VMEM((L, N, 4 * HIDDEN), jnp.float32)]),
        compiler_params=pltpu.CompilerParams(
            dimension_semantics=("arbitrary",)),
    )(*in_arrays)

    hiddens_last = jnp.transpose(out, (1, 0, 2))         # (N, max_L, H)
    return None, hiddens_last


def encoder_lstm_reference(x_tokens, p):
    """Pure-JAX reference mirroring the PyTorch forward."""
    H = HIDDEN
    N, L = x_tokens.shape
    h = [jnp.zeros((N, H), jnp.float32) for _ in range(NUM_LAYERS)]
    c = [jnp.zeros((N, H), jnp.float32) for _ in range(NUM_LAYERS)]
    outs = []
    for t in range(L):
        inp = p['emb'][x_tokens[:, t]]                   # (N, I)
        for l in range(NUM_LAYERS):
            g = (inp @ p[f'w_ih_l{l}'].T + h[l] @ p[f'w_hh_l{l}'].T
                 + p[f'b_ih_l{l}'] + p[f'b_hh_l{l}'])
            i_g = jax.nn.sigmoid(g[:, :H])
            f_g = jax.nn.sigmoid(g[:, H:2 * H])
            g_g = jnp.tanh(g[:, 2 * H:3 * H])
            o_g = jax.nn.sigmoid(g[:, 3 * H:])
            c[l] = f_g * c[l] + i_g * g_g
            h[l] = o_g * jnp.tanh(c[l])
            inp = h[l]
        outs.append(h[-1])
    return jnp.stack(outs, axis=1)                       # (N, L, H)


if __name__ == "__main__":
    key = jax.random.PRNGKey(0)
    kparams, kx = jax.random.split(key)
    params = init_torch_style_params(kparams)
    x_tokens = jax.random.randint(kx, (BATCH, MAX_LEN), 0, VOCAB, jnp.int32)

    _, hiddens = encoder_lstm_forward(x_tokens, params)
    hiddens = jax.block_until_ready(hiddens)

    assert hiddens.shape == (BATCH, MAX_LEN, HIDDEN)
    assert bool(jnp.all(jnp.isfinite(hiddens)))

    ref = encoder_lstm_reference(x_tokens, params)
    max_err = float(jnp.max(jnp.abs(hiddens - ref)))
    assert bool(jnp.allclose(hiddens, ref, atol=1e-2, rtol=1e-2)), max_err

    print("KERNEL_OK")
</pallas_src>

<mosaic_0001>
module attributes {stable_mosaic.version = 11 : i64} {
  func.func @encoder_lstm_kernel(%arg0: i32, %arg1: memref<32x1xi32, #tpu.memory_space<vmem>>, %arg2: memref<64x16xf32, #tpu.memory_space<vmem>>, %arg3: memref<16x128xf32, #tpu.memory_space<vmem>>, %arg4: memref<1x32x128xf32, #tpu.memory_space<vmem>>, %arg5: memref<2x32x128xf32, #tpu.memory_space<vmem>>, %arg6: memref<2x1x128xf32, #tpu.memory_space<vmem>>, %arg7: memref<8x4x32xf32, #tpu.memory_space<vmem>>, %arg8: memref<8x4x128xf32, #tpu.memory_space<vmem>>) attributes {dimension_semantics = [#tpu.dimension_semantics<arbitrary>], iteration_bounds = array<i64: 1>, scalar_prefetch = 0 : i64, scratch_operands = 1 : i64, tpu.core_type = #tpu.core_type<tc>, window_params = [{pipeline_mode = #tpu.pipeline_mode<synchronous>, transform_indices = @transform_0, window_bounds = array<i64: 32, 1>}, {pipeline_mode = #tpu.pipeline_mode<synchronous>, transform_indices = @transform_1, window_bounds = array<i64: 64, 16>}, {pipeline_mode = #tpu.pipeline_mode<synchronous>, transform_indices = @transform_2, window_bounds = array<i64: 16, 128>}, {pipeline_mode = #tpu.pipeline_mode<synchronous>, transform_indices = @transform_3, window_bounds = array<i64: 1, 32, 128>}, {pipeline_mode = #tpu.pipeline_mode<synchronous>, transform_indices = @transform_4, window_bounds = array<i64: 2, 32, 128>}, {pipeline_mode = #tpu.pipeline_mode<synchronous>, transform_indices = @transform_5, window_bounds = array<i64: 2, 1, 128>}, {pipeline_mode = #tpu.pipeline_mode<synchronous>, transform_indices = @transform_6, window_bounds = array<i64: 8, 4, 32>}]} {
    %0 = tpu.iota {dimensions = array<i32: 1>} : vector<32x64xi32>
    %c0 = arith.constant 0 : index
    %c0_0 = arith.constant 0 : index
    %1 = vector.load %arg1[%c0, %c0_0] : memref<32x1xi32, #tpu.memory_space<vmem>>, vector<32x1xi32>
    %2 = vector.broadcast %1 : vector<32x1xi32> to vector<32x64xi32>
    %3 = arith.cmpi eq, %0, %2 : vector<32x64xi32>
    %4 = arith.extui %3 : vector<32x64xi1> to vector<32x64xi32>
    %5 = arith.sitofp %4 : vector<32x64xi32> to vector<32x64xf32>
    %c0_1 = arith.constant 0 : index
    %c0_2 = arith.constant 0 : index
    %6 = vector.load %arg2[%c0_1, %c0_2] : memref<64x16xf32, #tpu.memory_space<vmem>>, vector<64x16xf32>
    %cst = arith.constant dense<0.000000e+00> : vector<32x16xf32>
    %7 = tpu.matmul %5, %6, %cst {dimension_numbers = #tpu.dot_dimension_numbers<[1], [0], [0], [1], [0, 0, 1, 1], [], []>} : vector<32x64xf32>, vector<64x16xf32>, vector<32x16xf32> -> vector<32x16xf32>
    %c0_3 = arith.constant 0 : index
    %c0_4 = arith.constant 0 : index
    %8 = vector.load %arg3[%c0_3, %c0_4] : memref<16x128xf32, #tpu.memory_space<vmem>>, vector<16x128xf32>
    %cst_5 = arith.constant dense<0.000000e+00> : vector<32x128xf32>
    %9 = tpu.matmul %7, %8, %cst_5 {dimension_numbers = #tpu.dot_dimension_numbers<[1], [0], [0], [1], [0, 0, 1, 1], [], []>} : vector<32x16xf32>, vector<16x128xf32>, vector<32x128xf32> -> vector<32x128xf32>
    %c0_6 = arith.constant 0 : index
    %c0_7 = arith.constant 0 : index
    %c0_8 = arith.constant 0 : index
    %10 = vector.load %arg6[%c0_6, %c0_7, %c0_8] : memref<2x1x128xf32, #tpu.memory_space<vmem>>, vector<1x1x128xf32>
    %11 = vector.shape_cast %10 : vector<1x1x128xf32> to vector<1x128xf32>
    %12 = vector.broadcast %11 : vector<1x128xf32> to vector<32x128xf32>
    %13 = arith.addf %9, %12 : vector<32x128xf32>
    %14 = vector.extract_strided_slice %13 {offsets = [0, 0], sizes = [4, 128], strides = [1, 1]} : vector<32x128xf32> to vector<4x128xf32>
    %c0_9 = arith.constant 0 : index
    %c0_10 = arith.constant 0 : index
    %c0_11 = arith.constant 0 : index
    %15 = vector.load %arg8[%c0_9, %c0_10, %c0_11] : memref<8x4x128xf32, #tpu.memory_space<vmem>>, vector<1x4x128xf32>
    %16 = vector.shape_cast %15 : vector<1x4x128xf32> to vector<4x128xf32>
    %17 = vector.shape_cast %14 : vector<4x128xf32> to vector<1x4x128xf32>
    tpu.vector_store %arg8[%c0_9, %c0_10, %c0_11], %17 {strides = array<i32>} : memref<8x4x128xf32, #tpu.memory_space<vmem>>, vector<1x4x128xf32>,
    %18 = vector.extract_strided_slice %13 {offsets = [4, 0], sizes = [4, 128], strides = [1, 1]} : vector<32x128xf32> to vector<4x128xf32>
    %c1 = arith.constant 1 : index
    %c0_12 = arith.constant 0 : index
    %c0_13 = arith.constant 0 : index
    %19 = vector.load %arg8[%c1, %c0_12, %c0_13] : memref<8x4x128xf32, #tpu.memory_space<vmem>>, vector<1x4x128xf32>
    %20 = vector.shape_cast %19 : vector<1x4x128xf32> to vector<4x128xf32>
    %21 = vector.shape_cast %18 : vector<4x128xf32> to vector<1x4x128xf32>
    tpu.vector_store %arg8[%c1, %c0_12, %c0_13], %21 {strides = array<i32>} : memref<8x4x128xf32, #tpu.memory_space<vmem>>, vector<1x4x128xf32>,
    %22 = vector.extract_strided_slice %13 {offsets = [8, 0], sizes = [4, 128], strides = [1, 1]} : vector<32x128xf32> to vector<4x128xf32>
    %c2 = arith.constant 2 : index
    %c0_14 = arith.constant 0 : index
    %c0_15 = arith.constant 0 : index
    %23 = vector.load %arg8[%c2, %c0_14, %c0_15] : memref<8x4x128xf32, #tpu.memory_space<vmem>>, vector<1x4x128xf32>
    %24 = vector.shape_cast %23 : vector<1x4x128xf32> to vector<4x128xf32>
    %25 = vector.shape_cast %22 : vector<4x128xf32> to vector<1x4x128xf32>
    tpu.vector_store %arg8[%c2, %c0_14, %c0_15], %25 {strides = array<i32>} : memref<8x4x128xf32, #tpu.memory_space<vmem>>, vector<1x4x128xf32>,
    %26 = vector.extract_strided_slice %13 {offsets = [12, 0], sizes = [4, 128], strides = [1, 1]} : vector<32x128xf32> to vector<4x128xf32>
    %c3 = arith.constant 3 : index
    %c0_16 = arith.constant 0 : index
    %c0_17 = arith.constant 0 : index
    %27 = vector.load %arg8[%c3, %c0_16, %c0_17] : memref<8x4x128xf32, #tpu.memory_space<vmem>>, vector<1x4x128xf32>
    %28 = vector.shape_cast %27 : vector<1x4x128xf32> to vector<4x128xf32>
    %29 = vector.shape_cast %26 : vector<4x128xf32> to vector<1x4x128xf32>
    tpu.vector_store %arg8[%c3, %c0_16, %c0_17], %29 {strides = array<i32>} : memref<8x4x128xf32, #tpu.memory_space<vmem>>, vector<1x4x128xf32>,
    %30 = vector.extract_strided_slice %13 {offsets = [16, 0], sizes = [4, 128], strides = [1, 1]} : vector<32x128xf32> to vector<4x128xf32>
    %c4 = arith.constant 4 : index
    %c0_18 = arith.constant 0 : index
    %c0_19 = arith.constant 0 : index
    %31 = vector.load %arg8[%c4, %c0_18, %c0_19] : memref<8x4x128xf32, #tpu.memory_space<vmem>>, vector<1x4x128xf32>
    %32 = vector.shape_cast %31 : vector<1x4x128xf32> to vector<4x128xf32>
    %33 = vector.shape_cast %30 : vector<4x128xf32> to vector<1x4x128xf32>
    tpu.vector_store %arg8[%c4, %c0_18, %c0_19], %33 {strides = array<i32>} : memref<8x4x128xf32, #tpu.memory_space<vmem>>, vector<1x4x128xf32>,
    %34 = vector.extract_strided_slice %13 {offsets = [20, 0], sizes = [4, 128], strides = [1, 1]} : vector<32x128xf32> to vector<4x128xf32>
    %c5 = arith.constant 5 : index
    %c0_20 = arith.constant 0 : index
    %c0_21 = arith.constant 0 : index
    %35 = vector.load %arg8[%c5, %c0_20, %c0_21] : memref<8x4x128xf32, #tpu.memory_space<vmem>>, vector<1x4x128xf32>
    %36 = vector.shape_cast %35 : vector<1x4x128xf32> to vector<4x128xf32>
    %37 = vector.shape_cast %34 : vector<4x128xf32> to vector<1x4x128xf32>
    tpu.vector_store %arg8[%c5, %c0_20, %c0_21], %37 {strides = array<i32>} : memref<8x4x128xf32, #tpu.memory_space<vmem>>, vector<1x4x128xf32>,
    %38 = vector.extract_strided_slice %13 {offsets = [24, 0], sizes = [4, 128], strides = [1, 1]} : vector<32x128xf32> to vector<4x128xf32>
    %c6 = arith.constant 6 : index
    %c0_22 = arith.constant 0 : index
    %c0_23 = arith.constant 0 : index
    %39 = vector.load %arg8[%c6, %c0_22, %c0_23] : memref<8x4x128xf32, #tpu.memory_space<vmem>>, vector<1x4x128xf32>
    %40 = vector.shape_cast %39 : vector<1x4x128xf32> to vector<4x128xf32>
    %41 = vector.shape_cast %38 : vector<4x128xf32> to vector<1x4x128xf32>
    tpu.vector_store %arg8[%c6, %c0_22, %c0_23], %41 {strides = array<i32>} : memref<8x4x128xf32, #tpu.memory_space<vmem>>, vector<1x4x128xf32>,
    %42 = vector.extract_strided_slice %13 {offsets = [28, 0], sizes = [4, 128], strides = [1, 1]} : vector<32x128xf32> to vector<4x128xf32>
    %c7 = arith.constant 7 : index
    %c0_24 = arith.constant 0 : index
    %c0_25 = arith.constant 0 : index
    %43 = vector.load %arg8[%c7, %c0_24, %c0_25] : memref<8x4x128xf32, #tpu.memory_space<vmem>>, vector<1x4x128xf32>
    %44 = vector.shape_cast %43 : vector<1x4x128xf32> to vector<4x128xf32>
    %45 = vector.shape_cast %42 : vector<4x128xf32> to vector<1x4x128xf32>
    tpu.vector_store %arg8[%c7, %c0_24, %c0_25], %45 {strides = array<i32>} : memref<8x4x128xf32, #tpu.memory_space<vmem>>, vector<1x4x128xf32>,
    %cst_26 = arith.constant 0.000000e+00 : f32
    %46 = vector.broadcast %cst_26 : f32 to vector<4x32xf32>
    %cst_27 = arith.constant 0.000000e+00 : f32
    %47 = vector.broadcast %cst_27 : f32 to vector<4x32xf32>
    %c0_i32 = arith.constant 0 : i32
    %48 = arith.index_cast %c0_i32 : i32 to index
    %c0_28 = arith.constant 0 : index
    %c0_29 = arith.constant 0 : index
    %49 = vector.load %arg8[%48, %c0_28, %c0_29] : memref<8x4x128xf32, #tpu.memory_space<vmem>>, vector<1x4x128xf32>
    %50 = vector.shape_cast %49 : vector<1x4x128xf32> to vector<4x128xf32>
    %c0_30 = arith.constant 0 : index
    %c0_31 = arith.constant 0 : index
    %c0_32 = arith.constant 0 : index
    %51 = vector.load %arg5[%c0_30, %c0_31, %c0_32] : memref<2x32x128xf32, #tpu.memory_space<vmem>>, vector<1x32x128xf32>
    %52 = vector.shape_cast %51 : vector<1x32x128xf32> to vector<32x128xf32>
    %cst_33 = arith.constant dense<0.000000e+00> : vector<4x128xf32>
    %53 = tpu.matmul %46, %52, %cst_33 {dimension_numbers = #tpu.dot_dimension_numbers<[1], [0], [0], [1], [0, 0, 1, 1], [], []>} : vector<4x32xf32>, vector<32x128xf32>, vector<4x128xf32> -> vector<4x128xf32>
    %54 = arith.addf %50, %53 : vector<4x128xf32>
    %55 = vector.extract_strided_slice %54 {offsets = [0, 0], sizes = [4, 32], strides = [1, 1]} : vector<4x128xf32> to vector<4x32xf32>
    %56 = arith.negf %55 : vector<4x32xf32>
    %57 = math.exp %56 : vector<4x32xf32>
    %cst_34 = arith.constant 1.000000e+00 : f32
    %58 = vector.broadcast %cst_34 : f32 to vector<4x32xf32>
    %59 = arith.addf %58, %57 : vector<4x32xf32>
    %60 = arith.divf %58, %59 : vector<4x32xf32>
    %61 = vector.extract_strided_slice %54 {offsets = [0, 32], sizes = [4, 32], strides = [1, 1]} : vector<4x128xf32> to vector<4x32xf32>
    %62 = arith.negf %61 : vector<4x32xf32>
    %63 = math.exp %62 : vector<4x32xf32>
    %cst_35 = arith.constant 1.000000e+00 : f32
    %64 = vector.broadcast %cst_35 : f32 to vector<4x32xf32>
    %65 = arith.addf %64, %63 : vector<4x32xf32>
    %66 = arith.divf %64, %65 : vector<4x32xf32>
    %67 = vector.extract_strided_slice %54 {offsets = [0, 64], sizes = [4, 32], strides = [1, 1]} : vector<4x128xf32> to vector<4x32xf32>
    %68 = math.tanh %67 : vector<4x32xf32>
    %69 = vector.extract_strided_slice %54 {offsets = [0, 96], sizes = [4, 32], strides = [1, 1]} : vector<4x128xf32> to vector<4x32xf32>
    %70 = arith.negf %69 : vector<4x32xf32>
    %71 = math.exp %70 : vector<4x32xf32>
    %cst_36 = arith.constant 1.000000e+00 : f32
    %72 = vector.broadcast %cst_36 : f32 to vector<4x32xf32>
    %73 = arith.addf %72, %71 : vector<4x32xf32>
    %74 = arith.divf %72, %73 : vector<4x32xf32>
    %75 = arith.mulf %66, %46 : vector<4x32xf32>
    %76 = arith.mulf %60, %68 : vector<4x32xf32>
    %77 = arith.addf %75, %76 : vector<4x32xf32>
    %78 = math.tanh %77 : vector<4x32xf32>
    %79 = arith.mulf %74, %78 : vector<4x32xf32>
    %c0_37 = arith.constant 0 : index
    %c0_38 = arith.constant 0 : index
    %c0_39 = arith.constant 0 : index
    %80 = vector.load %arg4[%c0_37, %c0_38, %c0_39] : memref<1x32x128xf32, #tpu.memory_space<vmem>>, vector<1x32x128xf32>
    %81 = vector.shape_cast %80 : vector<1x32x128xf32> to vector<32x128xf32>
    %cst_40 = arith.constant dense<0.000000e+00> : vector<4x128xf32>
    %82 = tpu.matmul %79, %81, %cst_40 {dimension_numbers = #tpu.dot_dimension_numbers<[1], [0], [0], [1], [0, 0, 1, 1], [], []>} : vector<4x32xf32>, vector<32x128xf32>, vector<4x128xf32> -> vector<4x128xf32>
    %c1_41 = arith.constant 1 : index
    %c0_42 = arith.constant 0 : index
    %c0_43 = arith.constant 0 : index
    %83 = vector.load %arg5[%c1_41, %c0_42, %c0_43] : memref<2x32x128xf32, #tpu.memory_space<vmem>>, vector<1x32x128xf32>
    %84 = vector.shape_cast %83 : vector<1x32x128xf32> to vector<32x128xf32>
    %cst_44 = arith.constant dense<0.000000e+00> : vector<4x128xf32>
    %85 = tpu.matmul %47, %84, %cst_44 {dimension_numbers = #tpu.dot_dimension_numbers<[1], [0], [0], [1], [0, 0, 1, 1], [], []>} : vector<4x32xf32>, vector<32x128xf32>, vector<4x128xf32> -> vector<4x128xf32>
    %86 = arith.addf %82, %85 : vector<4x128xf32>
    %c1_45 = arith.constant 1 : index
    %c0_46 = arith.constant 0 : index
    %c0_47 = arith.constant 0 : index
    %87 = vector.load %arg6[%c1_45, %c0_46, %c0_47] : memref<2x1x128xf32, #tpu.memory_space<vmem>>, vector<1x1x128xf32>
    %88 = vector.shape_cast %87 : vector<1x1x128xf32> to vector<1x128xf32>
    %89 = vector.broadcast %88 : vector<1x128xf32> to vector<4x128xf32>
    %90 = arith.addf %86, %89 : vector<4x128xf32>
    %91 = vector.extract_strided_slice %90 {offsets = [0, 0], sizes = [4, 32], strides = [1, 1]} : vector<4x128xf32> to vector<4x32xf32>
    %92 = arith.negf %91 : vector<4x32xf32>
    %93 = math.exp %92 : vector<4x32xf32>
    %cst_48 = arith.constant 1.000000e+00 : f32
    %94 = vector.broadcast %cst_48 : f32 to vector<4x32xf32>
    %95 = arith.addf %94, %93 : vector<4x32xf32>
    %96 = arith.divf %94, %95 : vector<4x32xf32>
    %97 = vector.extract_strided_slice %90 {offsets = [0, 32], sizes = [4, 32], strides = [1, 1]} : vector<4x128xf32> to vector<4x32xf32>
    %98 = arith.negf %97 : vector<4x32xf32>
    %99 = math.exp %98 : vector<4x32xf32>
    %cst_49 = arith.constant 1.000000e+00 : f32
    %100 = vector.broadcast %cst_49 : f32 to vector<4x32xf32>
    %101 = arith.addf %100, %99 : vector<4x32xf32>
    %102 = arith.divf %100, %101 : vector<4x32xf32>
    %103 = vector.extract_strided_slice %90 {offsets = [0, 64], sizes = [4, 32], strides = [1, 1]} : vector<4x128xf32> to vector<4x32xf32>
    %104 = math.tanh %103 : vector<4x32xf32>
    %105 = vector.extract_strided_slice %90 {offsets = [0, 96], sizes = [4, 32], strides = [1, 1]} : vector<4x128xf32> to vector<4x32xf32>
    %106 = arith.negf %105 : vector<4x32xf32>
    %107 = math.exp %106 : vector<4x32xf32>
    %cst_50 = arith.constant 1.000000e+00 : f32
    %108 = vector.broadcast %cst_50 : f32 to vector<4x32xf32>
    %109 = arith.addf %108, %107 : vector<4x32xf32>
    %110 = arith.divf %108, %109 : vector<4x32xf32>
    %111 = arith.mulf %102, %47 : vector<4x32xf32>
    %112 = arith.mulf %96, %104 : vector<4x32xf32>
    %113 = arith.addf %111, %112 : vector<4x32xf32>
    %114 = math.tanh %113 : vector<4x32xf32>
    %115 = arith.mulf %110, %114 : vector<4x32xf32>
    %116 = arith.index_cast %c0_i32 : i32 to index
    %c0_51 = arith.constant 0 : index
    %c0_52 = arith.constant 0 : index
    %117 = vector.load %arg7[%116, %c0_51, %c0_52] : memref<8x4x32xf32, #tpu.memory_space<vmem>>, vector<1x4x32xf32>
    %118 = vector.shape_cast %117 : vector<1x4x32xf32> to vector<4x32xf32>
    %119 = vector.shape_cast %115 : vector<4x32xf32> to vector<1x4x32xf32>
    tpu.vector_store %arg7[%116, %c0_51, %c0_52], %119 {strides = array<i32>} : memref<8x4x32xf32, #tpu.memory_space<vmem>>, vector<1x4x32xf32>,
    %c1_i32 = arith.constant 1 : i32
    %120 = arith.index_cast %c1_i32 : i32 to index
    %c0_53 = arith.constant 0 : index
    %c0_54 = arith.constant 0 : index
    %121 = vector.load %arg8[%120, %c0_53, %c0_54] : memref<8x4x128xf32, #tpu.memory_space<vmem>>, vector<1x4x128xf32>
    %122 = vector.shape_cast %121 : vector<1x4x128xf32> to vector<4x128xf32>
    %c0_55 = arith.constant 0 : index
    %c0_56 = arith.constant 0 : index
    %c0_57 = arith.constant 0 : index
    %123 = vector.load %arg5[%c0_55, %c0_56, %c0_57] : memref<2x32x128xf32, #tpu.memory_space<vmem>>, vector<1x32x128xf32>
    %124 = vector.shape_cast %123 : vector<1x32x128xf32> to vector<32x128xf32>
    %cst_58 = arith.constant dense<0.000000e+00> : vector<4x128xf32>
    %125 = tpu.matmul %79, %124, %cst_58 {dimension_numbers = #tpu.dot_dimension_numbers<[1], [0], [0], [1], [0, 0, 1, 1], [], []>} : vector<4x32xf32>, vector<32x128xf32>, vector<4x128xf32> -> vector<4x128xf32>
    %126 = arith.addf %122, %125 : vector<4x128xf32>
    %127 = vector.extract_strided_slice %126 {offsets = [0, 0], sizes = [4, 32], strides = [1, 1]} : vector<4x128xf32> to vector<4x32xf32>
    %128 = arith.negf %127 : vector<4x32xf32>
    %129 = math.exp %128 : vector<4x32xf32>
    %cst_59 = arith.constant 1.000000e+00 : f32
    %130 = vector.broadcast %cst_59 : f32 to vector<4x32xf32>
    %131 = arith.addf %130, %129 : vector<4x32xf32>
    %132 = arith.divf %130, %131 : vector<4x32xf32>
    %133 = vector.extract_strided_slice %126 {offsets = [0, 32], sizes = [4, 32], strides = [1, 1]} : vector<4x128xf32> to vector<4x32xf32>
    %134 = arith.negf %133 : vector<4x32xf32>
    %135 = math.exp %134 : vector<4x32xf32>
    %cst_60 = arith.constant 1.000000e+00 : f32
    %136 = vector.broadcast %cst_60 : f32 to vector<4x32xf32>
    %137 = arith.addf %136, %135 : vector<4x32xf32>
    %138 = arith.divf %136, %137 : vector<4x32xf32>
    %139 = vector.extract_strided_slice %126 {offsets = [0, 64], sizes = [4, 32], strides = [1, 1]} : vector<4x128xf32> to vector<4x32xf32>
    %140 = math.tanh %139 : vector<4x32xf32>
    %141 = vector.extract_strided_slice %126 {offsets = [0, 96], sizes = [4, 32], strides = [1, 1]} : vector<4x128xf32> to vector<4x32xf32>
    %142 = arith.negf %141 : vector<4x32xf32>
    %143 = math.exp %142 : vector<4x32xf32>
    %cst_61 = arith.constant 1.000000e+00 : f32
    %144 = vector.broadcast %cst_61 : f32 to vector<4x32xf32>
    %145 = arith.addf %144, %143 : vector<4x32xf32>
    %146 = arith.divf %144, %145 : vector<4x32xf32>
    %147 = arith.mulf %138, %77 : vector<4x32xf32>
    %148 = arith.mulf %132, %140 : vector<4x32xf32>
    %149 = arith.addf %147, %148 : vector<4x32xf32>
    %150 = math.tanh %149 : vector<4x32xf32>
    %151 = arith.mulf %146, %150 : vector<4x32xf32>
    %c0_62 = arith.constant 0 : index
    %c0_63 = arith.constant 0 : index
    %c0_64 = arith.constant 0 : index
    %152 = vector.load %arg4[%c0_62, %c0_63, %c0_64] : memref<1x32x128xf32, #tpu.memory_space<vmem>>, vector<1x32x128xf32>
    %153 = vector.shape_cast %152 : vector<1x32x128xf32> to vector<32x128xf32>
    %cst_65 = arith.constant dense<0.000000e+00> : vector<4x128xf32>
    %154 = tpu.matmul %151, %153, %cst_65 {dimension_numbers = #tpu.dot_dimension_numbers<[1], [0], [0], [1], [0, 0, 1, 1], [], []>} : vector<4x32xf32>, vector<32x128xf32>, vector<4x128xf32> -> vector<4x128xf32>
    %c1_66 = arith.constant 1 : index
    %c0_67 = arith.constant 0 : index
    %c0_68 = arith.constant 0 : index
    %155 = vector.load %arg5[%c1_66, %c0_67, %c0_68] : memref<2x32x128xf32, #tpu.memory_space<vmem>>, vector<1x32x128xf32>
    %156 = vector.shape_cast %155 : vector<1x32x128xf32> to vector<32x128xf32>
    %cst_69 = arith.constant dense<0.000000e+00> : vector<4x128xf32>
    %157 = tpu.matmul %115, %156, %cst_69 {dimension_numbers = #tpu.dot_dimension_numbers<[1], [0], [0], [1], [0, 0, 1, 1], [], []>} : vector<4x32xf32>, vector<32x128xf32>, vector<4x128xf32> -> vector<4x128xf32>
    %158 = arith.addf %154, %157 : vector<4x128xf32>
    %c1_70 = arith.constant 1 : index
    %c0_71 = arith.constant 0 : index
    %c0_72 = arith.constant 0 : index
    %159 = vector.load %arg6[%c1_70, %c0_71, %c0_72] : memref<2x1x128xf32, #tpu.memory_space<vmem>>, vector<1x1x128xf32>
    %160 = vector.shape_cast %159 : vector<1x1x128xf32> to vector<1x128xf32>
    %161 = vector.broadcast %160 : vector<1x128xf32> to vector<4x128xf32>
    %162 = arith.addf %158, %161 : vector<4x128xf32>
    %163 = vector.extract_strided_slice %162 {offsets = [0, 0], sizes = [4, 32], strides = [1, 1]} : vector<4x128xf32> to vector<4x32xf32>
    %164 = arith.negf %163 : vector<4x32xf32>
    %165 = math.exp %164 : vector<4x32xf32>
    %cst_73 = arith.constant 1.000000e+00 : f32
    %166 = vector.broadcast %cst_73 : f32 to vector<4x32xf32>
    %167 = arith.addf %166, %165 : vector<4x32xf32>
    %168 = arith.divf %166, %167 : vector<4x32xf32>
    %169 = vector.extract_strided_slice %162 {offsets = [0, 32], sizes = [4, 32], strides = [1, 1]} : vector<4x128xf32> to vector<4x32xf32>
    %170 = arith.negf %169 : vector<4x32xf32>
    %171 = math.exp %170 : vector<4x32xf32>
    %cst_74 = arith.constant 1.000000e+00 : f32
    %172 = vector.broadcast %cst_74 : f32 to vector<4x32xf32>
    %173 = arith.addf %172, %171 : vector<4x32xf32>
    %174 = arith.divf %172, %173 : vector<4x32xf32>
    %175 = vector.extract_strided_slice %162 {offsets = [0, 64], sizes = [4, 32], strides = [1, 1]} : vector<4x128xf32> to vector<4x32xf32>
    %176 = math.tanh %175 : vector<4x32xf32>
    %177 = vector.extract_strided_slice %162 {offsets = [0, 96], sizes = [4, 32], strides = [1, 1]} : vector<4x128xf32> to vector<4x32xf32>
    %178 = arith.negf %177 : vector<4x32xf32>
    %179 = math.exp %178 : vector<4x32xf32>
    %cst_75 = arith.constant 1.000000e+00 : f32
    %180 = vector.broadcast %cst_75 : f32 to vector<4x32xf32>
    %181 = arith.addf %180, %179 : vector<4x32xf32>
    %182 = arith.divf %180, %181 : vector<4x32xf32>
    %183 = arith.mulf %174, %113 : vector<4x32xf32>
    %184 = arith.mulf %168, %176 : vector<4x32xf32>
    %185 = arith.addf %183, %184 : vector<4x32xf32>
    %186 = math.tanh %185 : vector<4x32xf32>
    %187 = arith.mulf %182, %186 : vector<4x32xf32>
    %188 = arith.index_cast %c1_i32 : i32 to index
    %c0_76 = arith.constant 0 : index
    %c0_77 = arith.constant 0 : index
    %189 = vector.load %arg7[%188, %c0_76, %c0_77] : memref<8x4x32xf32, #tpu.memory_space<vmem>>, vector<1x4x32xf32>
    %190 = vector.shape_cast %189 : vector<1x4x32xf32> to vector<4x32xf32>
    %191 = vector.shape_cast %187 : vector<4x32xf32> to vector<1x4x32xf32>
    tpu.vector_store %arg7[%188, %c0_76, %c0_77], %191 {strides = array<i32>} : memref<8x4x32xf32, #tpu.memory_space<vmem>>, vector<1x4x32xf32>,
    %c2_i32 = arith.constant 2 : i32
    %192 = arith.index_cast %c2_i32 : i32 to index
    %c0_78 = arith.constant 0 : index
    %c0_79 = arith.constant 0 : index
    %193 = vector.load %arg8[%192, %c0_78, %c0_79] : memref<8x4x128xf32, #tpu.memory_space<vmem>>, vector<1x4x128xf32>
    %194 = vector.shape_cast %193 : vector<1x4x128xf32> to vector<4x128xf32>
    %c0_80 = arith.constant 0 : index
    %c0_81 = arith.constant 0 : index
    %c0_82 = arith.constant 0 : index
    %195 = vector.load %arg5[%c0_80, %c0_81, %c0_82] : memref<2x32x128xf32, #tpu.memory_space<vmem>>, vector<1x32x128xf32>
    %196 = vector.shape_cast %195 : vector<1x32x128xf32> to vector<32x128xf32>
    %cst_83 = arith.constant dense<0.000000e+00> : vector<4x128xf32>
    %197 = tpu.matmul %151, %196, %cst_83 {dimension_numbers = #tpu.dot_dimension_numbers<[1], [0], [0], [1], [0, 0, 1, 1], [], []>} : vector<4x32xf32>, vector<32x128xf32>, vector<4x128xf32> -> vector<4x128xf32>
    %198 = arith.addf %194, %197 : vector<4x128xf32>
    %199 = vector.extract_strided_slice %198 {offsets = [0, 0], sizes = [4, 32], strides = [1, 1]} : vector<4x128xf32> to vector<4x32xf32>
    %200 = arith.negf %199 : vector<4x32xf32>
    %201 = math.exp %200 : vector<4x32xf32>
    %cst_84 = arith.constant 1.000000e+00 : f32
    %202 = vector.broadcast %cst_84 : f32 to vector<4x32xf32>
    %203 = arith.addf %202, %201 : vector<4x32xf32>
    %204 = arith.divf %202, %203 : vector<4x32xf32>
    %205 = vector.extract_strided_slice %198 {offsets = [0, 32], sizes = [4, 32], strides = [1, 1]} : vector<4x128xf32> to vector<4x32xf32>
    %206 = arith.negf %205 : vector<4x32xf32>
    %207 = math.exp %206 : vector<4x32xf32>
    %cst_85 = arith.constant 1.000000e+00 : f32
    %208 = vector.broadcast %cst_85 : f32 to vector<4x32xf32>
    %209 = arith.addf %208, %207 : vector<4x32xf32>
    %210 = arith.divf %208, %209 : vector<4x32xf32>
    %211 = vector.extract_strided_slice %198 {offsets = [0, 64], sizes = [4, 32], strides = [1, 1]} : vector<4x128xf32> to vector<4x32xf32>
    %212 = math.tanh %211 : vector<4x32xf32>
    %213 = vector.extract_strided_slice %198 {offsets = [0, 96], sizes = [4, 32], strides = [1, 1]} : vector<4x128xf32> to vector<4x32xf32>
    %214 = arith.negf %213 : vector<4x32xf32>
    %215 = math.exp %214 : vector<4x32xf32>
    %cst_86 = arith.constant 1.000000e+00 : f32
    %216 = vector.broadcast %cst_86 : f32 to vector<4x32xf32>
    %217 = arith.addf %216, %215 : vector<4x32xf32>
    %218 = arith.divf %216, %217 : vector<4x32xf32>
    %219 = arith.mulf %210, %149 : vector<4x32xf32>
    %220 = arith.mulf %204, %212 : vector<4x32xf32>
    %221 = arith.addf %219, %220 : vector<4x32xf32>
    %222 = math.tanh %221 : vector<4x32xf32>
    %223 = arith.mulf %218, %222 : vector<4x32xf32>
    %c0_87 = arith.constant 0 : index
    %c0_88 = arith.constant 0 : index
    %c0_89 = arith.constant 0 : index
    %224 = vector.load %arg4[%c0_87, %c0_88, %c0_89] : memref<1x32x128xf32, #tpu.memory_space<vmem>>, vector<1x32x128xf32>
    %225 = vector.shape_cast %224 : vector<1x32x128xf32> to vector<32x128xf32>
    %cst_90 = arith.constant dense<0.000000e+00> : vector<4x128xf32>
    %226 = tpu.matmul %223, %225, %cst_90 {dimension_numbers = #tpu.dot_dimension_numbers<[1], [0], [0], [1], [0, 0, 1, 1], [], []>} : vector<4x32xf32>, vector<32x128xf32>, vector<4x128xf32> -> vector<4x128xf32>
    %c1_91 = arith.constant 1 : index
    %c0_92 = arith.constant 0 : index
    %c0_93 = arith.constant 0 : index
    %227 = vector.load %arg5[%c1_91, %c0_92, %c0_93] : memref<2x32x128xf32, #tpu.memory_space<vmem>>, vector<1x32x128xf32>
    %228 = vector.shape_cast %227 : vector<1x32x128xf32> to vector<32x128xf32>
    %cst_94 = arith.constant dense<0.000000e+00> : vector<4x128xf32>
    %229 = tpu.matmul %187, %228, %cst_94 {dimension_numbers = #tpu.dot_dimension_numbers<[1], [0], [0], [1], [0, 0, 1, 1], [], []>} : vector<4x32xf32>, vector<32x128xf32>, vector<4x128xf32> -> vector<4x128xf32>
    %230 = arith.addf %226, %229 : vector<4x128xf32>
    %c1_95 = arith.constant 1 : index
    %c0_96 = arith.constant 0 : index
    %c0_97 = arith.constant 0 : index
    %231 = vector.load %arg6[%c1_95, %c0_96, %c0_97] : memref<2x1x128xf32, #tpu.memory_space<vmem>>, vector<1x1x128xf32>
    %232 = vector.shape_cast %231 : vector<1x1x128xf32> to vector<1x128xf32>
    %233 = vector.broadcast %232 : vector<1x128xf32> to vector<4x128xf32>
    %234 = arith.addf %230, %233 : vector<4x128xf32>
    %235 = vector.extract_strided_slice %234 {offsets = [0, 0], sizes = [4, 32], strides = [1, 1]} : vector<4x128xf32> to vector<4x32xf32>
    %236 = arith.negf %235 : vector<4x32xf32>
    %237 = math.exp %236 : vector<4x32xf32>
    %cst_98 = arith.constant 1.000000e+00 : f32
    %238 = vector.broadcast %cst_98 : f32 to vector<4x32xf32>
    %239 = arith.addf %238, %237 : vector<4x32xf32>
    %240 = arith.divf %238, %239 : vector<4x32xf32>
    %241 = vector.extract_strided_slice %234 {offsets = [0, 32], sizes = [4, 32], strides = [1, 1]} : vector<4x128xf32> to vector<4x32xf32>
    %242 = arith.negf %241 : vector<4x32xf32>
    %243 = math.exp %242 : vector<4x32xf32>
    %cst_99 = arith.constant 1.000000e+00 : f32
    %244 = vector.broadcast %cst_99 : f32 to vector<4x32xf32>
    %245 = arith.addf %244, %243 : vector<4x32xf32>
    %246 = arith.divf %244, %245 : vector<4x32xf32>
    %247 = vector.extract_strided_slice %234 {offsets = [0, 64], sizes = [4, 32], strides = [1, 1]} : vector<4x128xf32> to vector<4x32xf32>
    %248 = math.tanh %247 : vector<4x32xf32>
    %249 = vector.extract_strided_slice %234 {offsets = [0, 96], sizes = [4, 32], strides = [1, 1]} : vector<4x128xf32> to vector<4x32xf32>
    %250 = arith.negf %249 : vector<4x32xf32>
    %251 = math.exp %250 : vector<4x32xf32>
    %cst_100 = arith.constant 1.000000e+00 : f32
    %252 = vector.broadcast %cst_100 : f32 to vector<4x32xf32>
    %253 = arith.addf %252, %251 : vector<4x32xf32>
    %254 = arith.divf %252, %253 : vector<4x32xf32>
    %255 = arith.mulf %246, %185 : vector<4x32xf32>
    %256 = arith.mulf %240, %248 : vector<4x32xf32>
    %257 = arith.addf %255, %256 : vector<4x32xf32>
    %258 = math.tanh %257 : vector<4x32xf32>
    %259 = arith.mulf %254, %258 : vector<4x32xf32>
    %260 = arith.index_cast %c2_i32 : i32 to index
    %c0_101 = arith.constant 0 : index
    %c0_102 = arith.constant 0 : index
    %261 = vector.load %arg7[%260, %c0_101, %c0_102] : memref<8x4x32xf32, #tpu.memory_space<vmem>>, vector<1x4x32xf32>
    %262 = vector.shape_cast %261 : vector<1x4x32xf32> to vector<4x32xf32>
    %263 = vector.shape_cast %259 : vector<4x32xf32> to vector<1x4x32xf32>
    tpu.vector_store %arg7[%260, %c0_101, %c0_102], %263 {strides = array<i32>} : memref<8x4x32xf32, #tpu.memory_space<vmem>>, vector<1x4x32xf32>,
    %c3_i32 = arith.constant 3 : i32
    %264 = arith.index_cast %c3_i32 : i32 to index
    %c0_103 = arith.constant 0 : index
    %c0_104 = arith.constant 0 : index
    %265 = vector.load %arg8[%264, %c0_103, %c0_104] : memref<8x4x128xf32, #tpu.memory_space<vmem>>, vector<1x4x128xf32>
    %266 = vector.shape_cast %265 : vector<1x4x128xf32> to vector<4x128xf32>
    %c0_105 = arith.constant 0 : index
    %c0_106 = arith.constant 0 : index
    %c0_107 = arith.constant 0 : index
    %267 = vector.load %arg5[%c0_105, %c0_106, %c0_107] : memref<2x32x128xf32, #tpu.memory_space<vmem>>, vector<1x32x128xf32>
    %268 = vector.shape_cast %267 : vector<1x32x128xf32> to vector<32x128xf32>
    %cst_108 = arith.constant dense<0.000000e+00> : vector<4x128xf32>
    %269 = tpu.matmul %223, %268, %cst_108 {dimension_numbers = #tpu.dot_dimension_numbers<[1], [0], [0], [1], [0, 0, 1, 1], [], []>} : vector<4x32xf32>, vector<32x128xf32>, vector<4x128xf32> -> vector<4x128xf32>
    %270 = arith.addf %266, %269 : vector<4x128xf32>
    %271 = vector.extract_strided_slice %270 {offsets = [0, 0], sizes = [4, 32], strides = [1, 1]} : vector<4x128xf32> to vector<4x32xf32>
    %272 = arith.negf %271 : vector<4x32xf32>
    %273 = math.exp %272 : vector<4x32xf32>
    %cst_109 = arith.constant 1.000000e+00 : f32
    %274 = vector.broadcast %cst_109 : f32 to vector<4x32xf32>
    %275 = arith.addf %274, %273 : vector<4x32xf32>
    %276 = arith.divf %274, %275 : vector<4x32xf32>
    %277 = vector.extract_strided_slice %270 {offsets = [0, 32], sizes = [4, 32], strides = [1, 1]} : vector<4x128xf32> to vector<4x32xf32>
    %278 = arith.negf %277 : vector<4x32xf32>
    %279 = math.exp %278 : vector<4x32xf32>
    %cst_110 = arith.constant 1.000000e+00 : f32
    %280 = vector.broadcast %cst_110 : f32 to vector<4x32xf32>
    %281 = arith.addf %280, %279 : vector<4x32xf32>
    %282 = arith.divf %280, %281 : vector<4x32xf32>
    %283 = vector.extract_strided_slice %270 {offsets = [0, 64], sizes = [4, 32], strides = [1, 1]} : vector<4x128xf32> to vector<4x32xf32>
    %284 = math.tanh %283 : vector<4x32xf32>
    %285 = vector.extract_strided_slice %270 {offsets = [0, 96], sizes = [4, 32], strides = [1, 1]} : vector<4x128xf32> to vector<4x32xf32>
    %286 = arith.negf %285 : vector<4x32xf32>
    %287 = math.exp %286 : vector<4x32xf32>
    %cst_111 = arith.constant 1.000000e+00 : f32
    %288 = vector.broadcast %cst_111 : f32 to vector<4x32xf32>
    %289 = arith.addf %288, %287 : vector<4x32xf32>
    %290 = arith.divf %288, %289 : vector<4x32xf32>
    %291 = arith.mulf %282, %221 : vector<4x32xf32>
    %292 = arith.mulf %276, %284 : vector<4x32xf32>
    %293 = arith.addf %291, %292 : vector<4x32xf32>
    %294 = math.tanh %293 : vector<4x32xf32>
    %295 = arith.mulf %290, %294 : vector<4x32xf32>
    %c0_112 = arith.constant 0 : index
    %c0_113 = arith.constant 0 : index
    %c0_114 = arith.constant 0 : index
    %296 = vector.load %arg4[%c0_112, %c0_113, %c0_114] : memref<1x32x128xf32, #tpu.memory_space<vmem>>, vector<1x32x128xf32>
    %297 = vector.shape_cast %296 : vector<1x32x128xf32> to vector<32x128xf32>
    %cst_115 = arith.constant dense<0.000000e+00> : vector<4x128xf32>
    %298 = tpu.matmul %295, %297, %cst_115 {dimension_numbers = #tpu.dot_dimension_numbers<[1], [0], [0], [1], [0, 0, 1, 1], [], []>} : vector<4x32xf32>, vector<32x128xf32>, vector<4x128xf32> -> vector<4x128xf32>
    %c1_116 = arith.constant 1 : index
    %c0_117 = arith.constant 0 : index
    %c0_118 = arith.constant 0 : index
    %299 = vector.load %arg5[%c1_116, %c0_117, %c0_118] : memref<2x32x128xf32, #tpu.memory_space<vmem>>, vector<1x32x128xf32>
    %300 = vector.shape_cast %299 : vector<1x32x128xf32> to vector<32x128xf32>
    %cst_119 = arith.constant dense<0.000000e+00> : vector<4x128xf32>
    %301 = tpu.matmul %259, %300, %cst_119 {dimension_numbers = #tpu.dot_dimension_numbers<[1], [0], [0], [1], [0, 0, 1, 1], [], []>} : vector<4x32xf32>, vector<32x128xf32>, vector<4x128xf32> -> vector<4x128xf32>
    %302 = arith.addf %298, %301 : vector<4x128xf32>
    %c1_120 = arith.constant 1 : index
    %c0_121 = arith.constant 0 : index
    %c0_122 = arith.constant 0 : index
    %303 = vector.load %arg6[%c1_120, %c0_121, %c0_122] : memref<2x1x128xf32, #tpu.memory_space<vmem>>, vector<1x1x128xf32>
    %304 = vector.shape_cast %303 : vector<1x1x128xf32> to vector<1x128xf32>
    %305 = vector.broadcast %304 : vector<1x128xf32> to vector<4x128xf32>
    %306 = arith.addf %302, %305 : vector<4x128xf32>
    %307 = vector.extract_strided_slice %306 {offsets = [0, 0], sizes = [4, 32], strides = [1, 1]} : vector<4x128xf32> to vector<4x32xf32>
    %308 = arith.negf %307 : vector<4x32xf32>
    %309 = math.exp %308 : vector<4x32xf32>
    %cst_123 = arith.constant 1.000000e+00 : f32
    %310 = vector.broadcast %cst_123 : f32 to vector<4x32xf32>
    %311 = arith.addf %310, %309 : vector<4x32xf32>
    %312 = arith.divf %310, %311 : vector<4x32xf32>
    %313 = vector.extract_strided_slice %306 {offsets = [0, 32], sizes = [4, 32], strides = [1, 1]} : vector<4x128xf32> to vector<4x32xf32>
    %314 = arith.negf %313 : vector<4x32xf32>
    %315 = math.exp %314 : vector<4x32xf32>
    %cst_124 = arith.constant 1.000000e+00 : f32
    %316 = vector.broadcast %cst_124 : f32 to vector<4x32xf32>
    %317 = arith.addf %316, %315 : vector<4x32xf32>
    %318 = arith.divf %316, %317 : vector<4x32xf32>
    %319 = vector.extract_strided_slice %306 {offsets = [0, 64], sizes = [4, 32], strides = [1, 1]} : vector<4x128xf32> to vector<4x32xf32>
    %320 = math.tanh %319 : vector<4x32xf32>
    %321 = vector.extract_strided_slice %306 {offsets = [0, 96], sizes = [4, 32], strides = [1, 1]} : vector<4x128xf32> to vector<4x32xf32>
    %322 = arith.negf %321 : vector<4x32xf32>
    %323 = math.exp %322 : vector<4x32xf32>
    %cst_125 = arith.constant 1.000000e+00 : f32
    %324 = vector.broadcast %cst_125 : f32 to vector<4x32xf32>
    %325 = arith.addf %324, %323 : vector<4x32xf32>
    %326 = arith.divf %324, %325 : vector<4x32xf32>
    %327 = arith.mulf %318, %257 : vector<4x32xf32>
    %328 = arith.mulf %312, %320 : vector<4x32xf32>
    %329 = arith.addf %327, %328 : vector<4x32xf32>
    %330 = math.tanh %329 : vector<4x32xf32>
    %331 = arith.mulf %326, %330 : vector<4x32xf32>
    %332 = arith.index_cast %c3_i32 : i32 to index
    %c0_126 = arith.constant 0 : index
    %c0_127 = arith.constant 0 : index
    %333 = vector.load %arg7[%332, %c0_126, %c0_127] : memref<8x4x32xf32, #tpu.memory_space<vmem>>, vector<1x4x32xf32>
    %334 = vector.shape_cast %333 : vector<1x4x32xf32> to vector<4x32xf32>
    %335 = vector.shape_cast %331 : vector<4x32xf32> to vector<1x4x32xf32>
    tpu.vector_store %arg7[%332, %c0_126, %c0_127], %335 {strides = array<i32>} : memref<8x4x32xf32, #tpu.memory_space<vmem>>, vector<1x4x32xf32>,
    %c4_i32 = arith.constant 4 : i32
    %336 = arith.index_cast %c4_i32 : i32 to index
    %c0_128 = arith.constant 0 : index
    %c0_129 = arith.constant 0 : index
    %337 = vector.load %arg8[%336, %c0_128, %c0_129] : memref<8x4x128xf32, #tpu.memory_space<vmem>>, vector<1x4x128xf32>
    %338 = vector.shape_cast %337 : vector<1x4x128xf32> to vector<4x128xf32>
    %c0_130 = arith.constant 0 : index
    %c0_131 = arith.constant 0 : index
    %c0_132 = arith.constant 0 : index
    %339 = vector.load %arg5[%c0_130, %c0_131, %c0_132] : memref<2x32x128xf32, #tpu.memory_space<vmem>>, vector<1x32x128xf32>
    %340 = vector.shape_cast %339 : vector<1x32x128xf32> to vector<32x128xf32>
    %cst_133 = arith.constant dense<0.000000e+00> : vector<4x128xf32>
    %341 = tpu.matmul %295, %340, %cst_133 {dimension_numbers = #tpu.dot_dimension_numbers<[1], [0], [0], [1], [0, 0, 1, 1], [], []>} : vector<4x32xf32>, vector<32x128xf32>, vector<4x128xf32> -> vector<4x128xf32>
    %342 = arith.addf %338, %341 : vector<4x128xf32>
    %343 = vector.extract_strided_slice %342 {offsets = [0, 0], sizes = [4, 32], strides = [1, 1]} : vector<4x128xf32> to vector<4x32xf32>
    %344 = arith.negf %343 : vector<4x32xf32>
    %345 = math.exp %344 : vector<4x32xf32>
    %cst_134 = arith.constant 1.000000e+00 : f32
    %346 = vector.broadcast %cst_134 : f32 to vector<4x32xf32>
    %347 = arith.addf %346, %345 : vector<4x32xf32>
    %348 = arith.divf %346, %347 : vector<4x32xf32>
    %349 = vector.extract_strided_slice %342 {offsets = [0, 32], sizes = [4, 32], strides = [1, 1]} : vector<4x128xf32> to vector<4x32xf32>
    %350 = arith.negf %349 : vector<4x32xf32>
    %351 = math.exp %350 : vector<4x32xf32>
    %cst_135 = arith.constant 1.000000e+00 : f32
    %352 = vector.broadcast %cst_135 : f32 to vector<4x32xf32>
    %353 = arith.addf %352, %351 : vector<4x32xf32>
    %354 = arith.divf %352, %353 : vector<4x32xf32>
    %355 = vector.extract_strided_slice %342 {offsets = [0, 64], sizes = [4, 32], strides = [1, 1]} : vector<4x128xf32> to vector<4x32xf32>
    %356 = math.tanh %355 : vector<4x32xf32>
    %357 = vector.extract_strided_slice %342 {offsets = [0, 96], sizes = [4, 32], strides = [1, 1]} : vector<4x128xf32> to vector<4x32xf32>
    %358 = arith.negf %357 : vector<4x32xf32>
    %359 = math.exp %358 : vector<4x32xf32>
    %cst_136 = arith.constant 1.000000e+00 : f32
    %360 = vector.broadcast %cst_136 : f32 to vector<4x32xf32>
    %361 = arith.addf %360, %359 : vector<4x32xf32>
    %362 = arith.divf %360, %361 : vector<4x32xf32>
    %363 = arith.mulf %354, %293 : vector<4x32xf32>
    %364 = arith.mulf %348, %356 : vector<4x32xf32>
    %365 = arith.addf %363, %364 : vector<4x32xf32>
    %366 = math.tanh %365 : vector<4x32xf32>
    %367 = arith.mulf %362, %366 : vector<4x32xf32>
    %c0_137 = arith.constant 0 : index
    %c0_138 = arith.constant 0 : index
    %c0_139 = arith.constant 0 : index
    %368 = vector.load %arg4[%c0_137, %c0_138, %c0_139] : memref<1x32x128xf32, #tpu.memory_space<vmem>>, vector<1x32x128xf32>
    %369 = vector.shape_cast %368 : vector<1x32x128xf32> to vector<32x128xf32>
    %cst_140 = arith.constant dense<0.000000e+00> : vector<4x128xf32>
    %370 = tpu.matmul %367, %369, %cst_140 {dimension_numbers = #tpu.dot_dimension_numbers<[1], [0], [0], [1], [0, 0, 1, 1], [], []>} : vector<4x32xf32>, vector<32x128xf32>, vector<4x128xf32> -> vector<4x128xf32>
    %c1_141 = arith.constant 1 : index
    %c0_142 = arith.constant 0 : index
    %c0_143 = arith.constant 0 : index
    %371 = vector.load %arg5[%c1_141, %c0_142, %c0_143] : memref<2x32x128xf32, #tpu.memory_space<vmem>>, vector<1x32x128xf32>
    %372 = vector.shape_cast %371 : vector<1x32x128xf32> to vector<32x128xf32>
    %cst_144 = arith.constant dense<0.000000e+00> : vector<4x128xf32>
    %373 = tpu.matmul %331, %372, %cst_144 {dimension_numbers = #tpu.dot_dimension_numbers<[1], [0], [0], [1], [0, 0, 1, 1], [], []>} : vector<4x32xf32>, vector<32x128xf32>, vector<4x128xf32> -> vector<4x128xf32>
    %374 = arith.addf %370, %373 : vector<4x128xf32>
    %c1_145 = arith.constant 1 : index
    %c0_146 = arith.constant 0 : index
    %c0_147 = arith.constant 0 : index
    %375 = vector.load %arg6[%c1_145, %c0_146, %c0_147] : memref<2x1x128xf32, #tpu.memory_space<vmem>>, vector<1x1x128xf32>
    %376 = vector.shape_cast %375 : vector<1x1x128xf32> to vector<1x128xf32>
    %377 = vector.broadcast %376 : vector<1x128xf32> to vector<4x128xf32>
    %378 = arith.addf %374, %377 : vector<4x128xf32>
    %379 = vector.extract_strided_slice %378 {offsets = [0, 0], sizes = [4, 32], strides = [1, 1]} : vector<4x128xf32> to vector<4x32xf32>
    %380 = arith.negf %379 : vector<4x32xf32>
    %381 = math.exp %380 : vector<4x32xf32>
    %cst_148 = arith.constant 1.000000e+00 : f32
    %382 = vector.broadcast %cst_148 : f32 to vector<4x32xf32>
    %383 = arith.addf %382, %381 : vector<4x32xf32>
    %384 = arith.divf %382, %383 : vector<4x32xf32>
    %385 = vector.extract_strided_slice %378 {offsets = [0, 32], sizes = [4, 32], strides = [1, 1]} : vector<4x128xf32> to vector<4x32xf32>
    %386 = arith.negf %385 : vector<4x32xf32>
    %387 = math.exp %386 : vector<4x32xf32>
    %cst_149 = arith.constant 1.000000e+00 : f32
    %388 = vector.broadcast %cst_149 : f32 to vector<4x32xf32>
    %389 = arith.addf %388, %387 : vector<4x32xf32>
    %390 = arith.divf %388, %389 : vector<4x32xf32>
    %391 = vector.extract_strided_slice %378 {offsets = [0, 64], sizes = [4, 32], strides = [1, 1]} : vector<4x128xf32> to vector<4x32xf32>
    %392 = math.tanh %391 : vector<4x32xf32>
    %393 = vector.extract_strided_slice %378 {offsets = [0, 96], sizes = [4, 32], strides = [1, 1]} : vector<4x128xf32> to vector<4x32xf32>
    %394 = arith.negf %393 : vector<4x32xf32>
    %395 = math.exp %394 : vector<4x32xf32>
    %cst_150 = arith.constant 1.000000e+00 : f32
    %396 = vector.broadcast %cst_150 : f32 to vector<4x32xf32>
    %397 = arith.addf %396, %395 : vector<4x32xf32>
    %398 = arith.divf %396, %397 : vector<4x32xf32>
    %399 = arith.mulf %390, %329 : vector<4x32xf32>
    %400 = arith.mulf %384, %392 : vector<4x32xf32>
    %401 = arith.addf %399, %400 : vector<4x32xf32>
    %402 = math.tanh %401 : vector<4x32xf32>
    %403 = arith.mulf %398, %402 : vector<4x32xf32>
    %404 = arith.index_cast %c4_i32 : i32 to index
    %c0_151 = arith.constant 0 : index
    %c0_152 = arith.constant 0 : index
    %405 = vector.load %arg7[%404, %c0_151, %c0_152] : memref<8x4x32xf32, #tpu.memory_space<vmem>>, vector<1x4x32xf32>
    %406 = vector.shape_cast %405 : vector<1x4x32xf32> to vector<4x32xf32>
    %407 = vector.shape_cast %403 : vector<4x32xf32> to vector<1x4x32xf32>
    tpu.vector_store %arg7[%404, %c0_151, %c0_152], %407 {strides = array<i32>} : memref<8x4x32xf32, #tpu.memory_space<vmem>>, vector<1x4x32xf32>,
    %c5_i32 = arith.constant 5 : i32
    %408 = arith.index_cast %c5_i32 : i32 to index
    %c0_153 = arith.constant 0 : index
    %c0_154 = arith.constant 0 : index
    %409 = vector.load %arg8[%408, %c0_153, %c0_154] : memref<8x4x128xf32, #tpu.memory_space<vmem>>, vector<1x4x128xf32>
    %410 = vector.shape_cast %409 : vector<1x4x128xf32> to vector<4x128xf32>
    %c0_155 = arith.constant 0 : index
    %c0_156 = arith.constant 0 : index
    %c0_157 = arith.constant 0 : index
    %411 = vector.load %arg5[%c0_155, %c0_156, %c0_157] : memref<2x32x128xf32, #tpu.memory_space<vmem>>, vector<1x32x128xf32>
    %412 = vector.shape_cast %411 : vector<1x32x128xf32> to vector<32x128xf32>
    %cst_158 = arith.constant dense<0.000000e+00> : vector<4x128xf32>
    %413 = tpu.matmul %367, %412, %cst_158 {dimension_numbers = #tpu.dot_dimension_numbers<[1], [0], [0], [1], [0, 0, 1, 1], [], []>} : vector<4x32xf32>, vector<32x128xf32>, vector<4x128xf32> -> vector<4x128xf32>
    %414 = arith.addf %410, %413 : vector<4x128xf32>
    %415 = vector.extract_strided_slice %414 {offsets = [0, 0], sizes = [4, 32], strides = [1, 1]} : vector<4x128xf32> to vector<4x32xf32>
    %416 = arith.negf %415 : vector<4x32xf32>
    %417 = math.exp %416 : vector<4x32xf32>
    %cst_159 = arith.constant 1.000000e+00 : f32
    %418 = vector.broadcast %cst_159 : f32 to vector<4x32xf32>
    %419 = arith.addf %418, %417 : vector<4x32xf32>
    %420 = arith.divf %418, %419 : vector<4x32xf32>
    %421 = vector.extract_strided_slice %414 {offsets = [0, 32], sizes = [4, 32], strides = [1, 1]} : vector<4x128xf32> to vector<4x32xf32>
    %422 = arith.negf %421 : vector<4x32xf32>
    %423 = math.exp %422 : vector<4x32xf32>
    %cst_160 = arith.constant 1.000000e+00 : f32
    %424 = vector.broadcast %cst_160 : f32 to vector<4x32xf32>
    %425 = arith.addf %424, %423 : vector<4x32xf32>
    %426 = arith.divf %424, %425 : vector<4x32xf32>
    %427 = vector.extract_strided_slice %414 {offsets = [0, 64], sizes = [4, 32], strides = [1, 1]} : vector<4x128xf32> to vector<4x32xf32>
    %428 = math.tanh %427 : vector<4x32xf32>
    %429 = vector.extract_strided_slice %414 {offsets = [0, 96], sizes = [4, 32], strides = [1, 1]} : vector<4x128xf32> to vector<4x32xf32>
    %430 = arith.negf %429 : vector<4x32xf32>
    %431 = math.exp %430 : vector<4x32xf32>
    %cst_161 = arith.constant 1.000000e+00 : f32
    %432 = vector.broadcast %cst_161 : f32 to vector<4x32xf32>
    %433 = arith.addf %432, %431 : vector<4x32xf32>
    %434 = arith.divf %432, %433 : vector<4x32xf32>
    %435 = arith.mulf %426, %365 : vector<4x32xf32>
    %436 = arith.mulf %420, %428 : vector<4x32xf32>
    %437 = arith.addf %435, %436 : vector<4x32xf32>
    %438 = math.tanh %437 : vector<4x32xf32>
    %439 = arith.mulf %434, %438 : vector<4x32xf32>
    %c0_162 = arith.constant 0 : index
    %c0_163 = arith.constant 0 : index
    %c0_164 = arith.constant 0 : index
    %440 = vector.load %arg4[%c0_162, %c0_163, %c0_164] : memref<1x32x128xf32, #tpu.memory_space<vmem>>, vector<1x32x128xf32>
    %441 = vector.shape_cast %440 : vector<1x32x128xf32> to vector<32x128xf32>
    %cst_165 = arith.constant dense<0.000000e+00> : vector<4x128xf32>
    %442 = tpu.matmul %439, %441, %cst_165 {dimension_numbers = #tpu.dot_dimension_numbers<[1], [0], [0], [1], [0, 0, 1, 1], [], []>} : vector<4x32xf32>, vector<32x128xf32>, vector<4x128xf32> -> vector<4x128xf32>
    %c1_166 = arith.constant 1 : index
    %c0_167 = arith.constant 0 : index
    %c0_168 = arith.constant 0 : index
    %443 = vector.load %arg5[%c1_166, %c0_167, %c0_168] : memref<2x32x128xf32, #tpu.memory_space<vmem>>, vector<1x32x128xf32>
    %444 = vector.shape_cast %443 : vector<1x32x128xf32> to vector<32x128xf32>
    %cst_169 = arith.constant dense<0.000000e+00> : vector<4x128xf32>
    %445 = tpu.matmul %403, %444, %cst_169 {dimension_numbers = #tpu.dot_dimension_numbers<[1], [0], [0], [1], [0, 0, 1, 1], [], []>} : vector<4x32xf32>, vector<32x128xf32>, vector<4x128xf32> -> vector<4x128xf32>
    %446 = arith.addf %442, %445 : vector<4x128xf32>
    %c1_170 = arith.constant 1 : index
    %c0_171 = arith.constant 0 : index
    %c0_172 = arith.constant 0 : index
    %447 = vector.load %arg6[%c1_170, %c0_171, %c0_172] : memref<2x1x128xf32, #tpu.memory_space<vmem>>, vector<1x1x128xf32>
    %448 = vector.shape_cast %447 : vector<1x1x128xf32> to vector<1x128xf32>
    %449 = vector.broadcast %448 : vector<1x128xf32> to vector<4x128xf32>
    %450 = arith.addf %446, %449 : vector<4x128xf32>
    %451 = vector.extract_strided_slice %450 {offsets = [0, 0], sizes = [4, 32], strides = [1, 1]} : vector<4x128xf32> to vector<4x32xf32>
    %452 = arith.negf %451 : vector<4x32xf32>
    %453 = math.exp %452 : vector<4x32xf32>
    %cst_173 = arith.constant 1.000000e+00 : f32
    %454 = vector.broadcast %cst_173 : f32 to vector<4x32xf32>
    %455 = arith.addf %454, %453 : vector<4x32xf32>
    %456 = arith.divf %454, %455 : vector<4x32xf32>
    %457 = vector.extract_strided_slice %450 {offsets = [0, 32], sizes = [4, 32], strides = [1, 1]} : vector<4x128xf32> to vector<4x32xf32>
    %458 = arith.negf %457 : vector<4x32xf32>
    %459 = math.exp %458 : vector<4x32xf32>
    %cst_174 = arith.constant 1.000000e+00 : f32
    %460 = vector.broadcast %cst_174 : f32 to vector<4x32xf32>
    %461 = arith.addf %460, %459 : vector<4x32xf32>
    %462 = arith.divf %460, %461 : vector<4x32xf32>
    %463 = vector.extract_strided_slice %450 {offsets = [0, 64], sizes = [4, 32], strides = [1, 1]} : vector<4x128xf32> to vector<4x32xf32>
    %464 = math.tanh %463 : vector<4x32xf32>
    %465 = vector.extract_strided_slice %450 {offsets = [0, 96], sizes = [4, 32], strides = [1, 1]} : vector<4x128xf32> to vector<4x32xf32>
    %466 = arith.negf %465 : vector<4x32xf32>
    %467 = math.exp %466 : vector<4x32xf32>
    %cst_175 = arith.constant 1.000000e+00 : f32
    %468 = vector.broadcast %cst_175 : f32 to vector<4x32xf32>
    %469 = arith.addf %468, %467 : vector<4x32xf32>
    %470 = arith.divf %468, %469 : vector<4x32xf32>
    %471 = arith.mulf %462, %401 : vector<4x32xf32>
    %472 = arith.mulf %456, %464 : vector<4x32xf32>
    %473 = arith.addf %471, %472 : vector<4x32xf32>
    %474 = math.tanh %473 : vector<4x32xf32>
    %475 = arith.mulf %470, %474 : vector<4x32xf32>
    %476 = arith.index_cast %c5_i32 : i32 to index
    %c0_176 = arith.constant 0 : index
    %c0_177 = arith.constant 0 : index
    %477 = vector.load %arg7[%476, %c0_176, %c0_177] : memref<8x4x32xf32, #tpu.memory_space<vmem>>, vector<1x4x32xf32>
    %478 = vector.shape_cast %477 : vector<1x4x32xf32> to vector<4x32xf32>
    %479 = vector.shape_cast %475 : vector<4x32xf32> to vector<1x4x32xf32>
    tpu.vector_store %arg7[%476, %c0_176, %c0_177], %479 {strides = array<i32>} : memref<8x4x32xf32, #tpu.memory_space<vmem>>, vector<1x4x32xf32>,
    %c6_i32 = arith.constant 6 : i32
    %480 = arith.index_cast %c6_i32 : i32 to index
    %c0_178 = arith.constant 0 : index
    %c0_179 = arith.constant 0 : index
    %481 = vector.load %arg8[%480, %c0_178, %c0_179] : memref<8x4x128xf32, #tpu.memory_space<vmem>>, vector<1x4x128xf32>
    %482 = vector.shape_cast %481 : vector<1x4x128xf32> to vector<4x128xf32>
    %c0_180 = arith.constant 0 : index
    %c0_181 = arith.constant 0 : index
    %c0_182 = arith.constant 0 : index
    %483 = vector.load %arg5[%c0_180, %c0_181, %c0_182] : memref<2x32x128xf32, #tpu.memory_space<vmem>>, vector<1x32x128xf32>
    %484 = vector.shape_cast %483 : vector<1x32x128xf32> to vector<32x128xf32>
    %cst_183 = arith.constant dense<0.000000e+00> : vector<4x128xf32>
    %485 = tpu.matmul %439, %484, %cst_183 {dimension_numbers = #tpu.dot_dimension_numbers<[1], [0], [0], [1], [0, 0, 1, 1], [], []>} : vector<4x32xf32>, vector<32x128xf32>, vector<4x128xf32> -> vector<4x128xf32>
    %486 = arith.addf %482, %485 : vector<4x128xf32>
    %487 = vector.extract_strided_slice %486 {offsets = [0, 0], sizes = [4, 32], strides = [1, 1]} : vector<4x128xf32> to vector<4x32xf32>
    %488 = arith.negf %487 : vector<4x32xf32>
    %489 = math.exp %488 : vector<4x32xf32>
    %cst_184 = arith.constant 1.000000e+00 : f32
    %490 = vector.broadcast %cst_184 : f32 to vector<4x32xf32>
    %491 = arith.addf %490, %489 : vector<4x32xf32>
    %492 = arith.divf %490, %491 : vector<4x32xf32>
    %493 = vector.extract_strided_slice %486 {offsets = [0, 32], sizes = [4, 32], strides = [1, 1]} : vector<4x128xf32> to vector<4x32xf32>
    %494 = arith.negf %493 : vector<4x32xf32>
    %495 = math.exp %494 : vector<4x32xf32>
    %cst_185 = arith.constant 1.000000e+00 : f32
    %496 = vector.broadcast %cst_185 : f32 to vector<4x32xf32>
    %497 = arith.addf %496, %495 : vector<4x32xf32>
    %498 = arith.divf %496, %497 : vector<4x32xf32>
    %499 = vector.extract_strided_slice %486 {offsets = [0, 64], sizes = [4, 32], strides = [1, 1]} : vector<4x128xf32> to vector<4x32xf32>
    %500 = math.tanh %499 : vector<4x32xf32>
    %501 = vector.extract_strided_slice %486 {offsets = [0, 96], sizes = [4, 32], strides = [1, 1]} : vector<4x128xf32> to vector<4x32xf32>
    %502 = arith.negf %501 : vector<4x32xf32>
    %503 = math.exp %502 : vector<4x32xf32>
    %cst_186 = arith.constant 1.000000e+00 : f32
    %504 = vector.broadcast %cst_186 : f32 to vector<4x32xf32>
    %505 = arith.addf %504, %503 : vector<4x32xf32>
    %506 = arith.divf %504, %505 : vector<4x32xf32>
    %507 = arith.mulf %498, %437 : vector<4x32xf32>
    %508 = arith.mulf %492, %500 : vector<4x32xf32>
    %509 = arith.addf %507, %508 : vector<4x32xf32>
    %510 = math.tanh %509 : vector<4x32xf32>
    %511 = arith.mulf %506, %510 : vector<4x32xf32>
    %c0_187 = arith.constant 0 : index
    %c0_188 = arith.constant 0 : index
    %c0_189 = arith.constant 0 : index
    %512 = vector.load %arg4[%c0_187, %c0_188, %c0_189] : memref<1x32x128xf32, #tpu.memory_space<vmem>>, vector<1x32x128xf32>
    %513 = vector.shape_cast %512 : vector<1x32x128xf32> to vector<32x128xf32>
    %cst_190 = arith.constant dense<0.000000e+00> : vector<4x128xf32>
    %514 = tpu.matmul %511, %513, %cst_190 {dimension_numbers = #tpu.dot_dimension_numbers<[1], [0], [0], [1], [0, 0, 1, 1], [], []>} : vector<4x32xf32>, vector<32x128xf32>, vector<4x128xf32> -> vector<4x128xf32>
    %c1_191 = arith.constant 1 : index
    %c0_192 = arith.constant 0 : index
    %c0_193 = arith.constant 0 : index
    %515 = vector.load %arg5[%c1_191, %c0_192, %c0_193] : memref<2x32x128xf32, #tpu.memory_space<vmem>>, vector<1x32x128xf32>
    %516 = vector.shape_cast %515 : vector<1x32x128xf32> to vector<32x128xf32>
    %cst_194 = arith.constant dense<0.000000e+00> : vector<4x128xf32>
    %517 = tpu.matmul %475, %516, %cst_194 {dimension_numbers = #tpu.dot_dimension_numbers<[1], [0], [0], [1], [0, 0, 1, 1], [], []>} : vector<4x32xf32>, vector<32x128xf32>, vector<4x128xf32> -> vector<4x128xf32>
    %518 = arith.addf %514, %517 : vector<4x128xf32>
    %c1_195 = arith.constant 1 : index
    %c0_196 = arith.constant 0 : index
    %c0_197 = arith.constant 0 : index
    %519 = vector.load %arg6[%c1_195, %c0_196, %c0_197] : memref<2x1x128xf32, #tpu.memory_space<vmem>>, vector<1x1x128xf32>
    %520 = vector.shape_cast %519 : vector<1x1x128xf32> to vector<1x128xf32>
    %521 = vector.broadcast %520 : vector<1x128xf32> to vector<4x128xf32>
    %522 = arith.addf %518, %521 : vector<4x128xf32>
    %523 = vector.extract_strided_slice %522 {offsets = [0, 0], sizes = [4, 32], strides = [1, 1]} : vector<4x128xf32> to vector<4x32xf32>
    %524 = arith.negf %523 : vector<4x32xf32>
    %525 = math.exp %524 : vector<4x32xf32>
    %cst_198 = arith.constant 1.000000e+00 : f32
    %526 = vector.broadcast %cst_198 : f32 to vector<4x32xf32>
    %527 = arith.addf %526, %525 : vector<4x32xf32>
    %528 = arith.divf %526, %527 : vector<4x32xf32>
    %529 = vector.extract_strided_slice %522 {offsets = [0, 32], sizes = [4, 32], strides = [1, 1]} : vector<4x128xf32> to vector<4x32xf32>
    %530 = arith.negf %529 : vector<4x32xf32>
    %531 = math.exp %530 : vector<4x32xf32>
    %cst_199 = arith.constant 1.000000e+00 : f32
    %532 = vector.broadcast %cst_199 : f32 to vector<4x32xf32>
    %533 = arith.addf %532, %531 : vector<4x32xf32>
    %534 = arith.divf %532, %533 : vector<4x32xf32>
    %535 = vector.extract_strided_slice %522 {offsets = [0, 64], sizes = [4, 32], strides = [1, 1]} : vector<4x128xf32> to vector<4x32xf32>
    %536 = math.tanh %535 : vector<4x32xf32>
    %537 = vector.extract_strided_slice %522 {offsets = [0, 96], sizes = [4, 32], strides = [1, 1]} : vector<4x128xf32> to vector<4x32xf32>
    %538 = arith.negf %537 : vector<4x32xf32>
    %539 = math.exp %538 : vector<4x32xf32>
    %cst_200 = arith.constant 1.000000e+00 : f32
    %540 = vector.broadcast %cst_200 : f32 to vector<4x32xf32>
    %541 = arith.addf %540, %539 : vector<4x32xf32>
    %542 = arith.divf %540, %541 : vector<4x32xf32>
    %543 = arith.mulf %534, %473 : vector<4x32xf32>
    %544 = arith.mulf %528, %536 : vector<4x32xf32>
    %545 = arith.addf %543, %544 : vector<4x32xf32>
    %546 = math.tanh %545 : vector<4x32xf32>
    %547 = arith.mulf %542, %546 : vector<4x32xf32>
    %548 = arith.index_cast %c6_i32 : i32 to index
    %c0_201 = arith.constant 0 : index
    %c0_202 = arith.constant 0 : index
    %549 = vector.load %arg7[%548, %c0_201, %c0_202] : memref<8x4x32xf32, #tpu.memory_space<vmem>>, vector<1x4x32xf32>
    %550 = vector.shape_cast %549 : vector<1x4x32xf32> to vector<4x32xf32>
    %551 = vector.shape_cast %547 : vector<4x32xf32> to vector<1x4x32xf32>
    tpu.vector_store %arg7[%548, %c0_201, %c0_202], %551 {strides = array<i32>} : memref<8x4x32xf32, #tpu.memory_space<vmem>>, vector<1x4x32xf32>,
    %c7_i32 = arith.constant 7 : i32
    %552 = arith.index_cast %c7_i32 : i32 to index
    %c0_203 = arith.constant 0 : index
    %c0_204 = arith.constant 0 : index
    %553 = vector.load %arg8[%552, %c0_203, %c0_204] : memref<8x4x128xf32, #tpu.memory_space<vmem>>, vector<1x4x128xf32>
    %554 = vector.shape_cast %553 : vector<1x4x128xf32> to vector<4x128xf32>
    %c0_205 = arith.constant 0 : index
    %c0_206 = arith.constant 0 : index
    %c0_207 = arith.constant 0 : index
    %555 = vector.load %arg5[%c0_205, %c0_206, %c0_207] : memref<2x32x128xf32, #tpu.memory_space<vmem>>, vector<1x32x128xf32>
    %556 = vector.shape_cast %555 : vector<1x32x128xf32> to vector<32x128xf32>
    %cst_208 = arith.constant dense<0.000000e+00> : vector<4x128xf32>
    %557 = tpu.matmul %511, %556, %cst_208 {dimension_numbers = #tpu.dot_dimension_numbers<[1], [0], [0], [1], [0, 0, 1, 1], [], []>} : vector<4x32xf32>, vector<32x128xf32>, vector<4x128xf32> -> vector<4x128xf32>
    %558 = arith.addf %554, %557 : vector<4x128xf32>
    %559 = vector.extract_strided_slice %558 {offsets = [0, 0], sizes = [4, 32], strides = [1, 1]} : vector<4x128xf32> to vector<4x32xf32>
    %560 = arith.negf %559 : vector<4x32xf32>
    %561 = math.exp %560 : vector<4x32xf32>
    %cst_209 = arith.constant 1.000000e+00 : f32
    %562 = vector.broadcast %cst_209 : f32 to vector<4x32xf32>
    %563 = arith.addf %562, %561 : vector<4x32xf32>
    %564 = arith.divf %562, %563 : vector<4x32xf32>
    %565 = vector.extract_strided_slice %558 {offsets = [0, 32], sizes = [4, 32], strides = [1, 1]} : vector<4x128xf32> to vector<4x32xf32>
    %566 = arith.negf %565 : vector<4x32xf32>
    %567 = math.exp %566 : vector<4x32xf32>
    %cst_210 = arith.constant 1.000000e+00 : f32
    %568 = vector.broadcast %cst_210 : f32 to vector<4x32xf32>
    %569 = arith.addf %568, %567 : vector<4x32xf32>
    %570 = arith.divf %568, %569 : vector<4x32xf32>
    %571 = vector.extract_strided_slice %558 {offsets = [0, 64], sizes = [4, 32], strides = [1, 1]} : vector<4x128xf32> to vector<4x32xf32>
    %572 = math.tanh %571 : vector<4x32xf32>
    %573 = vector.extract_strided_slice %558 {offsets = [0, 96], sizes = [4, 32], strides = [1, 1]} : vector<4x128xf32> to vector<4x32xf32>
    %574 = arith.negf %573 : vector<4x32xf32>
    %575 = math.exp %574 : vector<4x32xf32>
    %cst_211 = arith.constant 1.000000e+00 : f32
    %576 = vector.broadcast %cst_211 : f32 to vector<4x32xf32>
    %577 = arith.addf %576, %575 : vector<4x32xf32>
    %578 = arith.divf %576, %577 : vector<4x32xf32>
    %579 = arith.mulf %570, %509 : vector<4x32xf32>
    %580 = arith.mulf %564, %572 : vector<4x32xf32>
    %581 = arith.addf %579, %580 : vector<4x32xf32>
    %582 = math.tanh %581 : vector<4x32xf32>
    %583 = arith.mulf %578, %582 : vector<4x32xf32>
    %c0_212 = arith.constant 0 : index
    %c0_213 = arith.constant 0 : index
    %c0_214 = arith.constant 0 : index
    %584 = vector.load %arg4[%c0_212, %c0_213, %c0_214] : memref<1x32x128xf32, #tpu.memory_space<vmem>>, vector<1x32x128xf32>
    %585 = vector.shape_cast %584 : vector<1x32x128xf32> to vector<32x128xf32>
    %cst_215 = arith.constant dense<0.000000e+00> : vector<4x128xf32>
    %586 = tpu.matmul %583, %585, %cst_215 {dimension_numbers = #tpu.dot_dimension_numbers<[1], [0], [0], [1], [0, 0, 1, 1], [], []>} : vector<4x32xf32>, vector<32x128xf32>, vector<4x128xf32> -> vector<4x128xf32>
    %c1_216 = arith.constant 1 : index
    %c0_217 = arith.constant 0 : index
    %c0_218 = arith.constant 0 : index
    %587 = vector.load %arg5[%c1_216, %c0_217, %c0_218] : memref<2x32x128xf32, #tpu.memory_space<vmem>>, vector<1x32x128xf32>
    %588 = vector.shape_cast %587 : vector<1x32x128xf32> to vector<32x128xf32>
    %cst_219 = arith.constant dense<0.000000e+00> : vector<4x128xf32>
    %589 = tpu.matmul %547, %588, %cst_219 {dimension_numbers = #tpu.dot_dimension_numbers<[1], [0], [0], [1], [0, 0, 1, 1], [], []>} : vector<4x32xf32>, vector<32x128xf32>, vector<4x128xf32> -> vector<4x128xf32>
    %590 = arith.addf %586, %589 : vector<4x128xf32>
    %c1_220 = arith.constant 1 : index
    %c0_221 = arith.constant 0 : index
    %c0_222 = arith.constant 0 : index
    %591 = vector.load %arg6[%c1_220, %c0_221, %c0_222] : memref<2x1x128xf32, #tpu.memory_space<vmem>>, vector<1x1x128xf32>
    %592 = vector.shape_cast %591 : vector<1x1x128xf32> to vector<1x128xf32>
    %593 = vector.broadcast %592 : vector<1x128xf32> to vector<4x128xf32>
    %594 = arith.addf %590, %593 : vector<4x128xf32>
    %595 = vector.extract_strided_slice %594 {offsets = [0, 0], sizes = [4, 32], strides = [1, 1]} : vector<4x128xf32> to vector<4x32xf32>
    %596 = arith.negf %595 : vector<4x32xf32>
    %597 = math.exp %596 : vector<4x32xf32>
    %cst_223 = arith.constant 1.000000e+00 : f32
    %598 = vector.broadcast %cst_223 : f32 to vector<4x32xf32>
    %599 = arith.addf %598, %597 : vector<4x32xf32>
    %600 = arith.divf %598, %599 : vector<4x32xf32>
    %601 = vector.extract_strided_slice %594 {offsets = [0, 32], sizes = [4, 32], strides = [1, 1]} : vector<4x128xf32> to vector<4x32xf32>
    %602 = arith.negf %601 : vector<4x32xf32>
    %603 = math.exp %602 : vector<4x32xf32>
    %cst_224 = arith.constant 1.000000e+00 : f32
    %604 = vector.broadcast %cst_224 : f32 to vector<4x32xf32>
    %605 = arith.addf %604, %603 : vector<4x32xf32>
    %606 = arith.divf %604, %605 : vector<4x32xf32>
    %607 = vector.extract_strided_slice %594 {offsets = [0, 64], sizes = [4, 32], strides = [1, 1]} : vector<4x128xf32> to vector<4x32xf32>
    %608 = math.tanh %607 : vector<4x32xf32>
    %609 = vector.extract_strided_slice %594 {offsets = [0, 96], sizes = [4, 32], strides = [1, 1]} : vector<4x128xf32> to vector<4x32xf32>
    %610 = arith.negf %609 : vector<4x32xf32>
    %611 = math.exp %610 : vector<4x32xf32>
    %cst_225 = arith.constant 1.000000e+00 : f32
    %612 = vector.broadcast %cst_225 : f32 to vector<4x32xf32>
    %613 = arith.addf %612, %611 : vector<4x32xf32>
    %614 = arith.divf %612, %613 : vector<4x32xf32>
    %615 = arith.mulf %606, %545 : vector<4x32xf32>
    %616 = arith.mulf %600, %608 : vector<4x32xf32>
    %617 = arith.addf %615, %616 : vector<4x32xf32>
    %618 = math.tanh %617 : vector<4x32xf32>
    %619 = arith.mulf %614, %618 : vector<4x32xf32>
    %620 = arith.index_cast %c7_i32 : i32 to index
    %c0_226 = arith.constant 0 : index
    %c0_227 = arith.constant 0 : index
    %621 = vector.load %arg7[%620, %c0_226, %c0_227] : memref<8x4x32xf32, #tpu.memory_space<vmem>>, vector<1x4x32xf32>
    %622 = vector.shape_cast %621 : vector<1x4x32xf32> to vector<4x32xf32>
    %623 = vector.shape_cast %619 : vector<4x32xf32> to vector<1x4x32xf32>
    tpu.vector_store %arg7[%620, %c0_226, %c0_227], %623 {strides = array<i32>} : memref<8x4x32xf32, #tpu.memory_space<vmem>>, vector<1x4x32xf32>,
    %c8_i32 = arith.constant 8 : i32
    return
  }
  func.func @transform_0(%arg0: i32) -> (i32, i32) {
    %c0_i32 = arith.constant 0 : i32
    %c0_i32_0 = arith.constant 0 : i32
    %c0_i32_1 = arith.constant 0 : i32
    return %c0_i32, %c0_i32_0 : i32, i32
  }
  func.func @transform_1(%arg0: i32) -> (i32, i32) {
    %c0_i32 = arith.constant 0 : i32
    %c0_i32_0 = arith.constant 0 : i32
    %c0_i32_1 = arith.constant 0 : i32
    return %c0_i32, %c0_i32_0 : i32, i32
  }
  func.func @transform_2(%arg0: i32) -> (i32, i32) {
    %c0_i32 = arith.constant 0 : i32
    %c0_i32_0 = arith.constant 0 : i32
    %c0_i32_1 = arith.constant 0 : i32
    return %c0_i32, %c0_i32_0 : i32, i32
  }
  func.func @transform_3(%arg0: i32) -> (i32, i32, i32) {
    %c0_i32 = arith.constant 0 : i32
    %c0_i32_0 = arith.constant 0 : i32
    %c0_i32_1 = arith.constant 0 : i32
    %c0_i32_2 = arith.constant 0 : i32
    return %c0_i32, %c0_i32_0, %c0_i32_1 : i32, i32, i32
  }
  func.func @transform_4(%arg0: i32) -> (i32, i32, i32) {
    %c0_i32 = arith.constant 0 : i32
    %c0_i32_0 = arith.constant 0 : i32
    %c0_i32_1 = arith.constant 0 : i32
    %c0_i32_2 = arith.constant 0 : i32
    return %c0_i32, %c0_i32_0, %c0_i32_1 : i32, i32, i32
  }
  func.func @transform_5(%arg0: i32) -> (i32, i32, i32) {
    %c0_i32 = arith.constant 0 : i32
    %c0_i32_0 = arith.constant 0 : i32
    %c0_i32_1 = arith.constant 0 : i32
    %c0_i32_2 = arith.constant 0 : i32
    return %c0_i32, %c0_i32_0, %c0_i32_1 : i32, i32, i32
  }
  func.func @transform_6(%arg0: i32) -> (i32, i32, i32) {
    %c0_i32 = arith.constant 0 : i32
    %c0_i32_0 = arith.constant 0 : i32
    %c0_i32_1 = arith.constant 0 : i32
    %c0_i32_2 = arith.constant 0 : i32
    return %c0_i32, %c0_i32_0, %c0_i32_1 : i32, i32, i32
  }
}

</mosaic_0001>

<bundles_post_ra>
// kernel: tpu_custom_call.1
= control target key start
LH: loop header
LB: loop body
LE: loop exit
PB: predicated region body
PF: predicated region fallthrough
CT: control target
= control target key end

     0   :  { %v3505_v2 = vmov 0   ;;  %s3996_s0 = inlined_call_operand.vmem [shape: s32[32,1], index: 0, kind: input, shape index: {}]   ;;  %s3997_s1 = inlined_call_operand.vmem [shape: f32[64,16], index: 1, kind: input, shape index: {}]   ;;  %s3998_s2 = inlined_call_operand.vmem [shape: f32[16,128], index: 2, kind: input, shape index: {}]   ;;  %s3999_s3 = inlined_call_operand.vmem [shape: f32[1,32,128], index: 3, kind: input, shape index: {}]   ;;  %s4000_s4 = inlined_call_operand.vmem [shape: f32[2,32,128], index: 4, kind: input, shape index: {}]   ;;  %s4001_s5 = inlined_call_operand.vmem [shape: f32[2,1,128], index: 5, kind: input, shape index: {}]   ;;  %s4002_s6 = inlined_call_operand.hbm [shape: f32[8,4,32], index: 6, kind: output, shape index: {}]  }
   0x1   :  { %v26_v0 = vld [vmem:[%s3996_s0] sm:$0xff]  ;;  %v28_v1 = vld [vmem:[%s3996_s0 + $0x10] sm:$0xff]  ;;  %3351 = vset.pattern.permute.xlu0 %v3505_v2  ;;  %3352 = vset.pattern.permute.xlu1 %v3505_v2  ;;  %v55_v4 = vld [vmem:[%s3997_s1 + $0x8] sm:$0xff] }
   0x2   :  { %v54_v3 = vld [vmem:[%s3997_s1] sm:$0xff]  ;;  %31 = vperm.xlu0 %3351, %v26_v0   ;;  %37 = vperm.xlu1 %3352, %v28_v1   ;;  %v27_v5 = vld [vmem:[%s3996_s0 + $0x8] sm:$0xff]  ;;  %v56_v7 = vld [vmem:[%s3997_s1 + $0x10] sm:$0xff] }
   0x3   :  { %v3179_v6 = vpack.c.bf16 %v55_v4, %v54_v3  ;;  %v57_v8 = vld [vmem:[%s3997_s1 + $0x18] sm:$0xff]  ;;  %v58_v11 = vld [vmem:[%s3997_s1 + $0x20] sm:$0xff]  ;;  %v59_v12 = vld [vmem:[%s3997_s1 + $0x28] sm:$0xff] }
   0x4   :  { %v29_v9 = vld [vmem:[%s3996_s0 + $0x18] sm:$0xff]  ;;  %v3183_v10 = vpack.c.bf16 %v57_v8, %v56_v7 }
   0x5   :  { %3180 = vmatprep.subr.bf16.mxu0 %v3179_v6 }
   0x6   :  { %11 = vsyncpa [#allocation4], 0  ;;  %3182 = vmatpush3.bf16.msra.mxu0 %v3179_v6  ;;  %34 = vperm.xlu0 %3351, %v27_v5   ;;  %v3187_v13 = vpack.c.bf16 %v59_v12, %v58_v11  ;;  %v60_v14 = vld [vmem:[%s3997_s1 + $0x30] sm:$0xff]  ;;  %v61_v15 = vld [vmem:[%s3997_s1 + $0x38] sm:$0xff]  ;;  %v24_v20 = vlaneseq  ;;  %vm62_vm0 = vcmask 523264   ;;  %v3506_v24 = vmov 0.0  }
   0x7   :  { %40 = vperm.xlu1 %3352, %v29_v9   ;;  %3184 = vmatprep.subr.bf16.mxu0 %v3183_v10  ;;  %v3191_v16 = vpack.c.bf16 %v61_v15, %v60_v14  ;;  %v160_v17 = vld [vmem:[%s3998_s2] sm:$0xff]  ;;  %v161_v18 = vld [vmem:[%s3998_s2 + $0x8] sm:$0xff]  ;;  %v3507_v31 = vmov 0.0|0.0   ;;  %vm3508_vm5 = vmmov 0   ;;  %vm169_vm6 = vcmask 130048   ;;  %v285_v37 = vld [vmem:[%s4000_s4 + $0x10] sm:$0xff] }
   0x8   :  { %v3195_v19 = vpack.c.bf16 %v161_v18, %v160_v17  ;;  %v25_v21 = vand.u32 127, %v24_v20  ;;  %v283_v32 = vld [vmem:[%s4000_s4] sm:$0xff]  ;;  %v284_v33 = vld [vmem:[%s4000_s4 + $0x8] sm:$0xff]  ;;  %v286_v38 = vld [vmem:[%s4000_s4 + $0x18] sm:$0xff]  ;;  %s3509_s8 = smov 64   ;;  %s3510_s9 = smov 32  }
   0x9   :  { %v3604_v35 = vpack.c.bf16 %v284_v33, %v283_v32  ;;  %v3613_v40 = vpack.c.bf16 %v286_v38, %v285_v37  ;;  %v2654_v42 = vld [vmem:[%s4001_s5] ss:$0 sm:$0xff]  ;;  %v2661_v2 = vld [vmem:[%s4000_s4 + $0x28] sm:$0xff]  ;;  %v2662_v3 = vld [vmem:[%s4000_s4 + $0x30] sm:$0xff]  ;;  %vm287_vm7 = vcmask 261120   ;;  %vm577_vm8 = vcmask 257024  }
   0xa   :  { %3186 = vmatpush3.bf16.msra.mxu0 %v3183_v10  ;;  %3196 = vmatprep.subr.bf16.mxu1 %v3195_v19  ;;  %v2660_v1 = vld [vmem:[%s4000_s4 + $0x20] sm:$0xff]  ;;  %v2663_v5 = vld [vmem:[%s4000_s4 + $0x38] sm:$0xff]  ;;  %v387_v7 = vld [vmem:[%s3999_s3 + $0x8] sm:$0xff] }
   0xb   :  { %3188 = vmatprep.subr.bf16.mxu0 %v3187_v13  ;;  %3198 = vmatpush3.bf16.msra.mxu1 %v3195_v19  ;;  %v3640_v4 = vpack.c.bf16 %v2661_v2, %v2660_v1  ;;  %v386_v6 = vld [vmem:[%s3999_s3] sm:$0xff]  ;;  %v388_v9 = vld [vmem:[%s3999_s3 + $0x10] sm:$0xff]  ;;  %v389_v10 = vld [vmem:[%s3999_s3 + $0x18] sm:$0xff]  ;;  %v3660_v11 = vpack.c.bf16 %v2663_v5, %v2662_v3 }
   0xc   :  { %3199 = vmatprep.subr.bf16.mxu1 %v3507_v31  ;;  %v3651_v8 = vpack.c.bf16 %v387_v7, %v386_v6  ;;  %v3664_v12 = vpack.c.bf16 %v389_v10, %v388_v9  ;;  %v3697_v20 = vld [vmem:[%s4001_s5 + $0x1] ss:$0 sm:$0xff] }
   0xe   :  { %3190 = vmatpush3.bf16.msra.mxu0 %v3187_v13 }
   0xf   :  { %3192 = vmatprep.subr.bf16.mxu0 %v3191_v16 }
  0x12   :  { %3194 = vmatpush3.bf16.msra.mxu0 %v3191_v16 }
  0x13   :  { %3211 = vmatprep.subr.bf16.mxu0 %v3507_v31 }
  0x81   :  { %v32_v22 = vpop.permute.xlu0 %31  ;;  %v38_v23 = vpop.permute.xlu1 %37 }
  0x82   :  { %vm42_vm1 = vcmp.eq.s32.totalorder %v25_v21, %v32_v22  ;;  %vm44_vm2 = vcmp.eq.s32.totalorder %v25_v21, %v38_v23 }
  0x83   :  { %v2646_v25 = vsel %vm42_vm1, 1.0, %v3506_v24  ;;  %v2648_v28 = vsel %vm44_vm2, 1.0, %v3506_v24 }
  0x84   :  { %2899 = vmatprep.mubr.msk.f32.mxu0 %vm62_vm0, %v2646_v25 }
  0x85   :  { %v35_v26 = vpop.permute.xlu0 %34 }
  0x86   :  { %v41_v27 = vpop.permute.xlu1 %40  ;;  %vm43_vm3 = vcmp.eq.s32.totalorder %v25_v21, %v35_v26 }
  0x87   :  { %vm45_vm4 = vcmp.eq.s32.totalorder %v25_v21, %v41_v27  ;;  %v2647_v29 = vsel %vm43_vm3, 1.0, %v3506_v24 }
  0x88   :  { %2900 = vmatmul.mubr.msk.f32.vlgmr.msra.gmra.mrb[0].mxu0 %vm62_vm0, %v2647_v29  ;;  %v2649_v30 = vsel %vm45_vm4, 1.0, %v3506_v24 }
  0x89   :  { %2902 = vmatprep.mubr.msk.f32.mxu0 %vm62_vm0, %v2648_v28  ;;  %3213 = vmatpush3.bf16.msra.mxu0 %v3651_v8 }
  0x8a   :  { %3214 = vmatprep.subr.bf16.mxu0 %v3507_v31 }
  0x8c   :  { %2903 = vmatmul.mubr.msk.f32.gmra.mrb[2].mxu0 %vm62_vm0, %v2649_v30 }
  0x8d   :  { %2945 = vmatprep.mubr.msk.f32.mxu0 %vm3508_vm5, %v3506_v24  ;;  %3216 = vmatpush3.bf16.msra.mxu0 %v3664_v12 }
  0x8e   :  { %3223 = vmatprep.subr.bf16.mxu0 %v3507_v31 }
 0x15b   :  { %v2901_v34 = vpop.f32.mrb[0].mxu0 }
 0x15c   :  { %v141_v36 = vpop.f32.mrb[1].mxu0 }
 0x15d   :  { %2909 = vmatprep.mubr.msk.f32.mxu1 %vm169_vm6, %v141_v36 }
 0x15e   :  { %2910 = vmatmul.mubr.msk.f32.vlgmr.msra.gmra.mrb[0].mxu1 %vm169_vm6, %v2901_v34 }
 0x15f   :  { %v2904_v39 = vpop.f32.mrb[2].mxu0  ;;  %3201 = vmatpush3.bf16.msra.mxu1 %v3604_v35 }
 0x160   :  { %v151_v41 = vpop.f32.mrb[3].mxu0  ;;  %3202 = vmatprep.subr.bf16.mxu1 %v3507_v31 }
 0x161   :  { %2912 = vmatprep.mubr.msk.f32.mxu1 %vm169_vm6, %v151_v41 }
 0x162   :  { %2913 = vmatmul.mubr.msk.f32.gmra.mrb[2].mxu1 %vm169_vm6, %v2904_v39 }
 0x163   :  { %3204 = vmatpush3.bf16.msra.mxu1 %v3613_v40  ;;  %2923 = vmatprep.mubr.msk.f32.mxu1 %vm3508_vm5, %v3506_v24 }
 0x164   :  { %3205 = vmatprep.subr.bf16.mxu1 %v3507_v31 }
 0x166   :  { %2924 = vmatmul.mubr.f32.vlgmr.msra.gmra.mrb[4].mxu1 %v3506_v24 }
 0x167   :  { %2934 = vmatprep.mubr.msk.f32.mxu1 %vm3508_vm5, %v3506_v24  ;;  %3207 = vmatpush3.bf16.msra.mxu1 %v3640_v4 }
 0x168   :  { %3208 = vmatprep.subr.bf16.mxu1 %v3507_v31 }
 0x16b   :  { %3210 = vmatpush3.bf16.msra.mxu1 %v3660_v11 }
 0x16c   :  { %3217 = vmatprep.subr.bf16.mxu1 %v3507_v31 }
 0x16e   :  { %2935 = vmatmul.mubr.f32.vlgmr.msra.gmra.mrb[6].mxu1 %v3506_v24 }
 0x16f   :  { %3219 = vmatpush3.bf16.msra.mxu1 %v3604_v35  ;;  %2956 = vmatprep.mubr.msk.f32.mxu1 %vm3508_vm5, %v3506_v24 }
 0x170   :  { %3220 = vmatprep.subr.bf16.mxu1 %v3507_v31 }
 0x173   :  { %3222 = vmatpush3.bf16.msra.mxu1 %v3613_v40 }
 0x174   :  { %3229 = vmatprep.subr.bf16.mxu1 %v3507_v31 }
 0x231   :  { %v2911_v43 = vpop.f32.mrb[0].mxu1 }
 0x232   :  { %v254_v44 = vadd.f32 %v2911_v43, %v2654_v42  ;;  %v248_v45 = vpop.f32.mrb[1].mxu1 }
 0x233   :  { %v249_v46 = vadd.f32 %v2654_v42, %v248_v45 }
 0x234   :  { %271 = vst [vmem:[#allocation2 + $0x8] sm:$0xff] %v254_v44  }
 0x235   :  { %267 = vst [vmem:[#allocation2] sm:$0xff] %v249_v46   ;;  %v2914_v47 = vpop.f32.mrb[2].mxu1 }
 0x236   :  { %v264_v48 = vadd.f32 %v2914_v47, %v2654_v42  ;;  %v258_v49 = vpop.f32.mrb[3].mxu1 }
 0x237   :  { %v259_v50 = vadd.f32 %v2654_v42, %v258_v49 }
 0x238   :  { %279 = vst [vmem:[#allocation2 + $0x18] sm:$0xff] %v264_v48  }
 0x239   :  { %275 = vst [vmem:[#allocation2 + $0x10] sm:$0xff] %v259_v50   ;;  %v357_v51 = vpop.f32.mrb[4].mxu1 }
 0x23a   :  { %v2925_v52 = vpop.f32.mrb[5].mxu1 }
 0x23b   :  { %v872_v2 = vld [vmem:[#allocation2 + $0x8] sm:$0xf] }
 0x23c   :  { %v282_v53 = vld [vmem:[#allocation2] sm:$0xf]  ;;  %v579_v21 = vld [vmem:[#allocation2 + $0x4] sm:$0xf] }
 0x23d   :  { %v361_v54 = vadd.f32 %v357_v51, %v282_v53 }
 0x23f   :  { %3353 = vtanh.f32 %v361_v54  ;;  %v2659_v56 = vmul.f32 -1.442695, %v361_v54 }
 0x241   :  { %3355 = vpow2.f32 %v2659_v56  ;;  %v461_v16 = vpop.f32.mrb[6].mxu1 }
 0x242   :  { %v2936_v17 = vpop.f32.mrb[7].mxu1 }
 0x249   :  { %v3354_v55 = vpop.eup %3353 }
 0x24a   :  { %371 = vrot.lane.b32.xlu0 %v3354_v55, %s3509_s8 }
 0x24b   :  { %v3356_v57 = vpop.eup %3355 }
 0x24c   :  { %v365_v58 = vadd.f32 1.0, %v3356_v57 }
 0x24e   :  { %3357 = vrcp.f32 %v365_v58 }
 0x258   :  { %v3358_v59 = vpop.eup %3357 }
 0x259   :  { %v369_v62 = vmul.f32 0.0, %v3358_v59 }
 0x2bc   :  { %v372_v60 = vpop.permute.xlu0 %371 }
 0x2bd   :  { %v374_v61 = vmul.f32 %v3358_v59, %v372_v60 }
 0x2bf   :  { %376 = vrot.lane.b32.xlu1 %v374_v61, %s3510_s9 }
 0x331   :  { %v377_v63 = vpop.permute.xlu1 %376 }
 0x332   :  { %v3628_v0 = vadd.f32 %v377_v63, %v369_v62 }
 0x334   :  { %3359 = vtanh.f32 %v3628_v0 }
 0x33e   :  { %v3360_v13 = vpop.eup %3359 }
 0x33f   :  { %382 = vrot.lane.b32.xlu0 %v3360_v13, %s3509_s8 }
 0x3b1   :  { %v383_v14 = vpop.permute.xlu0 %382 }
 0x3b2   :  { %v385_v15 = vmul.f32 %v3358_v59, %v383_v14 }
 0x3b4   :  { %466 = vrot.lane.b32.xlu1 %v385_v15, %s3510_s9 }
 0x426   :  { %v467_v18 = vpop.permute.xlu1 %466 }
 0x427   :  { %2946 = vmatmul.mubr.msk.f32.vlgmr.msra.gmra.mrb[4].mxu0 %vm287_vm7, %v467_v18  ;;  %2957 = vmatmul.mubr.msk.f32.vlgmr.msra.gmra.mrb[8].mxu1 %vm287_vm7, %v467_v18 }
 0x428   :  { %3231 = vmatpush3.bf16.msra.mxu1 %v3651_v8  ;;  %3225 = vmatpush3.bf16.msra.mxu0 %v3640_v4 }
 0x429   :  { %3232 = vmatprep.subr.bf16.mxu1 %v3507_v31  ;;  %3226 = vmatprep.subr.bf16.mxu0 %v3507_v31 }
 0x42a   :  { %2978 = vmatprep.mubr.msk.f32.mxu1 %vm3508_vm5, %v3506_v24  ;;  %2967 = vmatprep.mubr.msk.f32.mxu0 %vm3508_vm5, %v3506_v24 }
 0x42c   :  { %3234 = vmatpush3.bf16.msra.mxu1 %v3664_v12  ;;  %3228 = vmatpush3.bf16.msra.mxu0 %v3660_v11 }
 0x42d   :  { %3235 = vmatprep.subr.bf16.mxu0 %v3507_v31  ;;  %3241 = vmatprep.subr.bf16.mxu1 %v3507_v31 }
 0x4fa   :  { %v536_v19 = vpop.f32.mrb[4].mxu0  ;;  %v650_v22 = vpop.f32.mrb[8].mxu1 }
 0x4fb   :  { %v537_v23 = vadd.f32 %v536_v19, %v461_v16  ;;  %v654_v25 = vadd.f32 %v650_v22, %v579_v21  ;;  %v2947_v26 = vpop.f32.mrb[5].mxu0  ;;  %v2958_v27 = vpop.f32.mrb[9].mxu1 }
 0x4fd   :  { %v548_v28 = vadd.f32 %v3697_v20, %v537_v23  ;;  %3361 = vtanh.f32 %v654_v25  ;;  %v2669_v32 = vmul.f32 -1.442695, %v654_v25 }
 0x4ff   :  { %3363 = vtanh.f32 %v548_v28  ;;  %v2667_v33 = vmul.f32 -1.442695, %v548_v28 }
 0x500   :  { %3365 = vpow2.f32 %v2669_v32 }
 0x501   :  { %3367 = vpow2.f32 %v2667_v33 }
 0x507   :  { %v3362_v29 = vpop.eup %3361 }
 0x508   :  { %664 = vrot.lane.b32.xlu1 %v3362_v29, %s3509_s8 }
 0x509   :  { %v3364_v30 = vpop.eup %3363 }
 0x50a   :  { %558 = vrot.lane.b32.xlu0 %v3364_v30, %s3509_s8  ;;  %v3366_v34 = vpop.eup %3365 }
 0x50b   :  { %v3368_v36 = vpop.eup %3367  ;;  %v658_v37 = vadd.f32 1.0, %v3366_v34 }
 0x50c   :  { %v552_v38 = vadd.f32 1.0, %v3368_v36 }
 0x50d   :  { %3369 = vrcp.f32 %v658_v37 }
 0x50e   :  { %3371 = vrcp.f32 %v552_v38 }
 0x517   :  { %v3370_v39 = vpop.eup %3369 }
 0x518   :  { %v3372_v43 = vpop.eup %3371  ;;  %v662_v46 = vmul.f32 %v3370_v39, %v3628_v0 }
 0x519   :  { %v556_v49 = vmul.f32 0.0, %v3372_v43 }
 0x57a   :  { %v665_v41 = vpop.permute.xlu1 %664 }
 0x57b   :  { %v667_v42 = vmul.f32 %v3370_v39, %v665_v41 }
 0x57c   :  { %v559_v44 = vpop.permute.xlu0 %558 }
 0x57d   :  { %v561_v45 = vmul.f32 %v3372_v43, %v559_v44  ;;  %669 = vrot.lane.b32.xlu1 %v667_v42, %s3510_s9 }
 0x57f   :  { %563 = vrot.lane.b32.xlu0 %v561_v45, %s3510_s9 }
 0x5ef   :  { %v670_v47 = vpop.permute.xlu1 %669 }
 0x5f0   :  { %v3705_v48 = vadd.f32 %v670_v47, %v662_v46 }
 0x5f1   :  { %v564_v50 = vpop.permute.xlu0 %563 }
 0x5f2   :  { %3373 = vtanh.f32 %v3705_v48  ;;  %v3708_v51 = vadd.f32 %v564_v50, %v556_v49 }
 0x5f4   :  { %3375 = vtanh.f32 %v3708_v51 }
 0x5fc   :  { %v3374_v52 = vpop.eup %3373 }
 0x5fd   :  { %675 = vrot.lane.b32.xlu1 %v3374_v52, %s3509_s8 }
 0x5fe   :  { %v3376_v53 = vpop.eup %3375 }
 0x5ff   :  { %569 = vrot.lane.b32.xlu0 %v3376_v53, %s3509_s8 }
 0x66f   :  { %v676_v54 = vpop.permute.xlu1 %675 }
 0x670   :  { %v678_v55 = vmul.f32 %v3370_v39, %v676_v54 }
 0x671   :  { %v570_v56 = vpop.permute.xlu0 %569 }
 0x672   :  { %v572_v57 = vmul.f32 %v3372_v43, %v570_v56  ;;  %760 = vrot.lane.b32.xlu1 %v678_v55, %s3510_s9 }
 0x674   :  { %574 = vrot.lane.b32.xlu0 %v572_v57, %s3510_s9 }
 0x6e4   :  { %v761_v58 = vpop.permute.xlu1 %760 }
 0x6e5   :  { %2979 = vmatmul.mubr.msk.f32.vlgmr.msra.gmra.mrb[10].mxu1 %vm287_vm7, %v761_v58 }
 0x6e6   :  { %v575_v59 = vpop.permute.xlu0 %574  ;;  %3243 = vmatpush3.bf16.msra.mxu1 %v3640_v4  ;;  %3000 = vmatprep.mubr.msk.f32.mxu1 %vm3508_vm5, %v3506_v24 }
 0x6e7   :  { %578 = vst.msk [vmem:[#allocation3] sm:$0xf] %vm577_vm8, %v575_v59  ;;  %2968 = vmatmul.mubr.msk.f32.vlgmr.msra.gmra.mrb[6].mxu0 %vm287_vm7, %v575_v59  ;;  %3244 = vmatprep.subr.bf16.mxu1 %v3507_v31 }
 0x6e8   :  { %3237 = vmatpush3.bf16.msra.mxu0 %v3604_v35  ;;  %2989 = vmatprep.mubr.msk.f32.mxu0 %vm3508_vm5, %v3506_v24 }
 0x6e9   :  { %3238 = vmatprep.subr.bf16.mxu0 %v3507_v31 }
 0x6ea   :  { %3246 = vmatpush3.bf16.msra.mxu1 %v3660_v11 }
 0x6eb   :  { %3253 = vmatprep.subr.bf16.mxu1 %v3507_v31 }
 0x6ec   :  { %3240 = vmatpush3.bf16.msra.mxu0 %v3613_v40 }
 0x6ed   :  { %3247 = vmatprep.subr.bf16.mxu0 %v3507_v31 }
 0x6ef   :  { %2990 = vmatmul.mubr.msk.f32.vlgmr.msra.gmra.mrb[8].mxu0 %vm287_vm7, %v761_v58 }
 0x6f0   :  { %3249 = vmatpush3.bf16.msra.mxu0 %v3651_v8  ;;  %3011 = vmatprep.mubr.msk.f32.mxu0 %vm3508_vm5, %v3506_v24 }
 0x6f1   :  { %3250 = vmatprep.subr.bf16.mxu0 %v3507_v31 }
 0x6f4   :  { %3252 = vmatpush3.bf16.msra.mxu0 %v3664_v12 }
 0x6f5   :  { %3259 = vmatprep.subr.bf16.mxu0 %v3507_v31 }
 0x7b8   :  { %v830_v60 = vpop.f32.mrb[10].mxu1 }
 0x7b9   :  { %v2980_v61 = vpop.f32.mrb[11].mxu1 }
 0x7ba   :  { %v755_v62 = vpop.f32.mrb[6].mxu0 }
 0x7bb   :  { %v831_v63 = vadd.f32 %v830_v60, %v755_v62  ;;  %v2969_v0 = vpop.f32.mrb[7].mxu0 }
 0x7bd   :  { %v841_v1 = vadd.f32 %v3697_v20, %v831_v63 }
 0x7bf   :  { %3377 = vtanh.f32 %v841_v1  ;;  %v2678_v10 = vmul.f32 -1.442695, %v841_v1 }
 0x7c2   :  { %v943_v3 = vpop.f32.mrb[8].mxu0 }
 0x7c3   :  { %v947_v5 = vadd.f32 %v943_v3, %v872_v2  ;;  %v2991_v6 = vpop.f32.mrb[9].mxu0 }
 0x7c5   :  { %3379 = vtanh.f32 %v947_v5  ;;  %v2680_v13 = vmul.f32 -1.442695, %v947_v5 }
 0x7c6   :  { %3381 = vpow2.f32 %v2678_v10 }
 0x7c7   :  { %3383 = vpow2.f32 %v2680_v13 }
 0x7c9   :  { %v3378_v7 = vpop.eup %3377 }
 0x7ca   :  { %851 = vrot.lane.b32.xlu0 %v3378_v7, %s3509_s8 }
 0x7cf   :  { %v3380_v9 = vpop.eup %3379 }
 0x7d0   :  { %957 = vrot.lane.b32.xlu1 %v3380_v9, %s3509_s8  ;;  %v3382_v14 = vpop.eup %3381 }
 0x7d1   :  { %v845_v15 = vadd.f32 1.0, %v3382_v14  ;;  %v3384_v16 = vpop.eup %3383 }
 0x7d2   :  { %v951_v17 = vadd.f32 1.0, %v3384_v16 }
 0x7d3   :  { %3385 = vrcp.f32 %v845_v15 }
 0x7d4   :  { %3387 = vrcp.f32 %v951_v17 }
 0x7dd   :  { %v3386_v18 = vpop.eup %3385 }
 0x7de   :  { %v3388_v22 = vpop.eup %3387  ;;  %v849_v26 = vmul.f32 %v3386_v18, %v3708_v51 }
 0x7df   :  { %v955_v29 = vmul.f32 %v3388_v22, %v3705_v48  ;;  %v1165_v48 = vld [vmem:[#allocation2 + $0xc] sm:$0xf] }
 0x83c   :  { %v852_v19 = vpop.permute.xlu0 %851 }
 0x83d   :  { %v854_v21 = vmul.f32 %v3386_v18, %v852_v19 }
 0x83f   :  { %856 = vrot.lane.b32.xlu0 %v854_v21, %s3510_s9 }
 0x842   :  { %v958_v23 = vpop.permute.xlu1 %957 }
 0x843   :  { %v960_v25 = vmul.f32 %v3388_v22, %v958_v23 }
 0x845   :  { %962 = vrot.lane.b32.xlu1 %v960_v25, %s3510_s9 }
 0x8b1   :  { %v857_v27 = vpop.permute.xlu0 %856 }
 0x8b2   :  { %v3743_v28 = vadd.f32 %v857_v27, %v849_v26 }
 0x8b4   :  { %3389 = vtanh.f32 %v3743_v28 }
 0x8b7   :  { %v963_v30 = vpop.permute.xlu1 %962 }
 0x8b8   :  { %v3747_v32 = vadd.f32 %v963_v30, %v955_v29  ;;  %v1458_v29 = vld [vmem:[#allocation2 + $0x10] sm:$0xf] }
 0x8ba   :  { %3391 = vtanh.f32 %v3747_v32 }
 0x8be   :  { %v3390_v33 = vpop.eup %3389 }
 0x8bf   :  { %862 = vrot.lane.b32.xlu0 %v3390_v33, %s3509_s8 }
 0x8c4   :  { %v3392_v34 = vpop.eup %3391 }
 0x8c5   :  { %968 = vrot.lane.b32.xlu1 %v3392_v34, %s3509_s8 }
 0x931   :  { %v863_v36 = vpop.permute.xlu0 %862 }
 0x932   :  { %v865_v37 = vmul.f32 %v3386_v18, %v863_v36 }
 0x934   :  { %867 = vrot.lane.b32.xlu0 %v865_v37, %s3510_s9 }
 0x937   :  { %v969_v38 = vpop.permute.xlu1 %968 }
 0x938   :  { %v971_v39 = vmul.f32 %v3388_v22, %v969_v38 }
 0x93a   :  { %1053 = vrot.lane.b32.xlu1 %v971_v39, %s3510_s9 }
 0x9a6   :  { %v868_v41 = vpop.permute.xlu0 %867 }
 0x9a7   :  { %871 = vst.msk [vmem:[#allocation3 + $0x4] sm:$0xf] %vm577_vm8, %v868_v41  ;;  %3001 = vmatmul.mubr.msk.f32.vlgmr.msra.gmra.mrb[12].mxu1 %vm287_vm7, %v868_v41 }
 0x9a8   :  { %3255 = vmatpush3.bf16.msra.mxu1 %v3604_v35  ;;  %3022 = vmatprep.mubr.msk.f32.mxu1 %vm3508_vm5, %v3506_v24 }
 0x9a9   :  { %3256 = vmatprep.subr.bf16.mxu1 %v3507_v31 }
 0x9ac   :  { %v1054_v42 = vpop.permute.xlu1 %1053  ;;  %3258 = vmatpush3.bf16.msra.mxu1 %v3613_v40 }
 0x9ad   :  { %3012 = vmatmul.mubr.msk.f32.vlgmr.msra.gmra.mrb[10].mxu0 %vm287_vm7, %v1054_v42  ;;  %3265 = vmatprep.subr.bf16.mxu1 %v3507_v31 }
 0x9ae   :  { %3261 = vmatpush3.bf16.msra.mxu0 %v3640_v4  ;;  %3033 = vmatprep.mubr.msk.f32.mxu0 %vm3508_vm5, %v3506_v24 }
 0x9af   :  { %3023 = vmatmul.mubr.msk.f32.vlgmr.msra.gmra.mrb[14].mxu1 %vm287_vm7, %v1054_v42  ;;  %3262 = vmatprep.subr.bf16.mxu0 %v3507_v31 }
 0x9b0   :  { %3267 = vmatpush3.bf16.msra.mxu1 %v3651_v8  ;;  %3044 = vmatprep.mubr.msk.f32.mxu1 %vm3508_vm5, %v3506_v24 }
 0x9b1   :  { %3268 = vmatprep.subr.bf16.mxu1 %v3507_v31 }
 0x9b2   :  { %3264 = vmatpush3.bf16.msra.mxu0 %v3660_v11 }
 0x9b3   :  { %3271 = vmatprep.subr.bf16.mxu0 %v3507_v31 }
 0x9b4   :  { %3270 = vmatpush3.bf16.msra.mxu1 %v3664_v12 }
 0x9b5   :  { %3277 = vmatprep.subr.bf16.mxu1 %v3507_v31 }
 0xa7a   :  { %v1048_v43 = vpop.f32.mrb[12].mxu1 }
 0xa7b   :  { %v3002_v44 = vpop.f32.mrb[13].mxu1 }
 0xa80   :  { %v1123_v45 = vpop.f32.mrb[10].mxu0 }
 0xa81   :  { %v1124_v46 = vadd.f32 %v1123_v45, %v1048_v43  ;;  %v3013_v47 = vpop.f32.mrb[11].mxu0 }
 0xa82   :  { %v1236_v49 = vpop.f32.mrb[14].mxu1 }
 0xa83   :  { %v1134_v50 = vadd.f32 %v3697_v20, %v1124_v46  ;;  %v1240_v51 = vadd.f32 %v1236_v49, %v1165_v48  ;;  %v3024_v52 = vpop.f32.mrb[15].mxu1 }
 0xa85   :  { %3393 = vtanh.f32 %v1134_v50  ;;  %v2689_v55 = vmul.f32 -1.442695, %v1134_v50  ;;  %v2691_v56 = vmul.f32 -1.442695, %v1240_v51 }
 0xa86   :  { %3395 = vtanh.f32 %v1240_v51 }
 0xa87   :  { %3397 = vpow2.f32 %v2689_v55 }
 0xa88   :  { %3399 = vpow2.f32 %v2691_v56 }
 0xa8f   :  { %v3394_v53 = vpop.eup %3393 }
 0xa90   :  { %v3396_v54 = vpop.eup %3395  ;;  %1144 = vrot.lane.b32.xlu0 %v3394_v53, %s3509_s8 }
 0xa91   :  { %1250 = vrot.lane.b32.xlu1 %v3396_v54, %s3509_s8  ;;  %v3398_v57 = vpop.eup %3397 }
 0xa92   :  { %v3400_v58 = vpop.eup %3399  ;;  %v1138_v59 = vadd.f32 1.0, %v3398_v57 }
 0xa93   :  { %v1244_v60 = vadd.f32 1.0, %v3400_v58 }
 0xa94   :  { %3401 = vrcp.f32 %v1138_v59 }
 0xa95   :  { %3403 = vrcp.f32 %v1244_v60 }
 0xa9e   :  { %v3402_v61 = vpop.eup %3401 }
 0xa9f   :  { %v3404_v63 = vpop.eup %3403  ;;  %v1142_v3 = vmul.f32 %v3402_v61, %v3743_v28 }
 0xaa0   :  { %v1248_v6 = vmul.f32 %v3404_v63, %v3747_v32 }
 0xb02   :  { %v1145_v62 = vpop.permute.xlu0 %1144 }
 0xb03   :  { %v1147_v0 = vmul.f32 %v3402_v61, %v1145_v62  ;;  %v1251_v1 = vpop.permute.xlu1 %1250 }
 0xb04   :  { %v1253_v2 = vmul.f32 %v3404_v63, %v1251_v1 }
 0xb05   :  { %1149 = vrot.lane.b32.xlu0 %v1147_v0, %s3510_s9 }
 0xb06   :  { %1255 = vrot.lane.b32.xlu1 %v1253_v2, %s3510_s9 }
 0xb77   :  { %v1150_v5 = vpop.permute.xlu0 %1149 }
 0xb78   :  { %v3783_v7 = vadd.f32 %v1150_v5, %v1142_v3  ;;  %v1256_v9 = vpop.permute.xlu1 %1255 }
 0xb79   :  { %v3785_v10 = vadd.f32 %v1256_v9, %v1248_v6 }
 0xb7a   :  { %3405 = vtanh.f32 %v3783_v7 }
 0xb7b   :  { %3407 = vtanh.f32 %v3785_v10 }
 0xb84   :  { %v3406_v13 = vpop.eup %3405 }
 0xb85   :  { %v3408_v14 = vpop.eup %3407  ;;  %1155 = vrot.lane.b32.xlu0 %v3406_v13, %s3509_s8 }
 0xb86   :  { %1261 = vrot.lane.b32.xlu1 %v3408_v14, %s3509_s8 }
 0xbf7   :  { %v1156_v15 = vpop.permute.xlu0 %1155 }
 0xbf8   :  { %v1158_v16 = vmul.f32 %v3402_v61, %v1156_v15  ;;  %v1262_v17 = vpop.permute.xlu1 %1261 }
 0xbf9   :  { %v1264_v18 = vmul.f32 %v3404_v63, %v1262_v17 }
 0xbfa   :  { %1160 = vrot.lane.b32.xlu0 %v1158_v16, %s3510_s9 }
 0xbfb   :  { %1346 = vrot.lane.b32.xlu1 %v1264_v18, %s3510_s9 }
 0xc6c   :  { %v1161_v19 = vpop.permute.xlu0 %1160 }
 0xc6d   :  { %1164 = vst.msk [vmem:[#allocation3 + $0x8] sm:$0xf] %vm577_vm8, %v1161_v19  ;;  %v1347_v21 = vpop.permute.xlu1 %1346  ;;  %3034 = vmatmul.mubr.msk.f32.vlgmr.msra.gmra.mrb[12].mxu0 %vm287_vm7, %v1161_v19 }
 0xc6e   :  { %3045 = vmatmul.mubr.msk.f32.vlgmr.msra.gmra.mrb[16].mxu1 %vm287_vm7, %v1347_v21  ;;  %3273 = vmatpush3.bf16.msra.mxu0 %v3604_v35 }
 0xc6f   :  { %3274 = vmatprep.subr.bf16.mxu0 %v3507_v31  ;;  %3055 = vmatprep.mubr.msk.f32.mxu0 %vm3508_vm5, %v3506_v24 }
 0xc70   :  { %3279 = vmatpush3.bf16.msra.mxu1 %v3640_v4  ;;  %3066 = vmatprep.mubr.msk.f32.mxu1 %vm3508_vm5, %v3506_v24 }
 0xc71   :  { %3280 = vmatprep.subr.bf16.mxu1 %v3507_v31 }
 0xc72   :  { %3276 = vmatpush3.bf16.msra.mxu0 %v3613_v40 }
 0xc73   :  { %3283 = vmatprep.subr.bf16.mxu0 %v3507_v31 }
 0xc74   :  { %3282 = vmatpush3.bf16.msra.mxu1 %v3660_v11 }
 0xc75   :  { %3056 = vmatmul.mubr.msk.f32.vlgmr.msra.gmra.mrb[14].mxu0 %vm287_vm7, %v1347_v21  ;;  %3289 = vmatprep.subr.bf16.mxu1 %v3507_v31 }
 0xc76   :  { %3285 = vmatpush3.bf16.msra.mxu0 %v3651_v8  ;;  %3077 = vmatprep.mubr.msk.f32.mxu0 %vm3508_vm5, %v3506_v24 }
 0xc77   :  { %3286 = vmatprep.subr.bf16.mxu0 %v3507_v31 }
 0xc7a   :  { %3288 = vmatpush3.bf16.msra.mxu0 %v3664_v12 }
 0xc7b   :  { %3295 = vmatprep.subr.bf16.mxu0 %v3507_v31 }
 0xd40   :  { %v1341_v22 = vpop.f32.mrb[12].mxu0 }
 0xd41   :  { %v1416_v23 = vpop.f32.mrb[16].mxu1  ;;  %v3035_v25 = vpop.f32.mrb[13].mxu0 }
 0xd42   :  { %v1417_v26 = vadd.f32 %v1416_v23, %v1341_v22  ;;  %v3046_v27 = vpop.f32.mrb[17].mxu1 }
 0xd44   :  { %v1427_v28 = vadd.f32 %v3697_v20, %v1417_v26 }
 0xd46   :  { %3409 = vtanh.f32 %v1427_v28  ;;  %v2700_v37 = vmul.f32 -1.442695, %v1427_v28 }
 0xd48   :  { %v1529_v30 = vpop.f32.mrb[14].mxu0 }
 0xd49   :  { %v1533_v32 = vadd.f32 %v1529_v30, %v1458_v29  ;;  %v3057_v33 = vpop.f32.mrb[15].mxu0 }
 0xd4b   :  { %3411 = vtanh.f32 %v1533_v32  ;;  %v2702_v38 = vmul.f32 -1.442695, %v1533_v32 }
 0xd4c   :  { %3413 = vpow2.f32 %v2700_v37 }
 0xd4d   :  { %3415 = vpow2.f32 %v2702_v38 }
 0xd50   :  { %v3410_v34 = vpop.eup %3409 }
 0xd51   :  { %1437 = vrot.lane.b32.xlu0 %v3410_v34, %s3509_s8 }
 0xd55   :  { %v3412_v36 = vpop.eup %3411 }
 0xd56   :  { %1543 = vrot.lane.b32.xlu1 %v3412_v36, %s3509_s8  ;;  %v3414_v39 = vpop.eup %3413 }
 0xd57   :  { %v1431_v41 = vadd.f32 1.0, %v3414_v39  ;;  %v3416_v42 = vpop.eup %3415 }
 0xd58   :  { %v1537_v43 = vadd.f32 1.0, %v3416_v42 }
 0xd59   :  { %3417 = vrcp.f32 %v1431_v41 }
 0xd5a   :  { %3419 = vrcp.f32 %v1537_v43 }
 0xd63   :  { %v3418_v44 = vpop.eup %3417 }
 0xd64   :  { %v3420_v47 = vpop.eup %3419  ;;  %v1435_v50 = vmul.f32 %v3418_v44, %v3783_v7  ;;  %v1751_v7 = vld [vmem:[#allocation2 + $0x14] sm:$0xf] }
 0xd65   :  { %v1541_v53 = vmul.f32 %v3420_v47, %v3785_v10 }
 0xdc3   :  { %v1438_v45 = vpop.permute.xlu0 %1437 }
 0xdc4   :  { %v1440_v46 = vmul.f32 %v3418_v44, %v1438_v45 }
 0xdc6   :  { %1442 = vrot.lane.b32.xlu0 %v1440_v46, %s3510_s9 }
 0xdc8   :  { %v1544_v48 = vpop.permute.xlu1 %1543 }
 0xdc9   :  { %v1546_v49 = vmul.f32 %v3420_v47, %v1544_v48 }
 0xdcb   :  { %1548 = vrot.lane.b32.xlu1 %v1546_v49, %s3510_s9  ;;  %v2044_v49 = vld [vmem:[#allocation2 + $0x18] sm:$0xf] }
 0xe38   :  { %v1443_v51 = vpop.permute.xlu0 %1442 }
 0xe39   :  { %v3821_v52 = vadd.f32 %v1443_v51, %v1435_v50 }
 0xe3b   :  { %3421 = vtanh.f32 %v3821_v52 }
 0xe3d   :  { %v1549_v54 = vpop.permute.xlu1 %1548 }
 0xe3e   :  { %v3825_v55 = vadd.f32 %v1549_v54, %v1541_v53 }
 0xe40   :  { %3423 = vtanh.f32 %v3825_v55 }
 0xe45   :  { %v3422_v56 = vpop.eup %3421 }
 0xe46   :  { %1448 = vrot.lane.b32.xlu0 %v3422_v56, %s3509_s8 }
 0xe4a   :  { %v3424_v57 = vpop.eup %3423 }
 0xe4b   :  { %1554 = vrot.lane.b32.xlu1 %v3424_v57, %s3509_s8 }
 0xeb8   :  { %v1449_v58 = vpop.permute.xlu0 %1448 }
 0xeb9   :  { %v1451_v59 = vmul.f32 %v3418_v44, %v1449_v58 }
 0xebb   :  { %1453 = vrot.lane.b32.xlu0 %v1451_v59, %s3510_s9 }
 0xebd   :  { %v1555_v60 = vpop.permute.xlu1 %1554 }
 0xebe   :  { %v1557_v61 = vmul.f32 %v3420_v47, %v1555_v60 }
 0xec0   :  { %1639 = vrot.lane.b32.xlu1 %v1557_v61, %s3510_s9 }
 0xf2d   :  { %v1454_v62 = vpop.permute.xlu0 %1453 }
 0xf2e   :  { %1457 = vst.msk [vmem:[#allocation3 + $0xc] sm:$0xf] %vm577_vm8, %v1454_v62  ;;  %3067 = vmatmul.mubr.msk.f32.vlgmr.msra.gmra.mrb[18].mxu1 %vm287_vm7, %v1454_v62 }
 0xf2f   :  { %3291 = vmatpush3.bf16.msra.mxu1 %v3604_v35  ;;  %3088 = vmatprep.mubr.msk.f32.mxu1 %vm3508_vm5, %v3506_v24 }
 0xf30   :  { %3292 = vmatprep.subr.bf16.mxu1 %v3507_v31 }
 0xf32   :  { %v1640_v63 = vpop.permute.xlu1 %1639 }
 0xf33   :  { %3294 = vmatpush3.bf16.msra.mxu1 %v3613_v40  ;;  %3078 = vmatmul.mubr.msk.f32.vlgmr.msra.gmra.mrb[16].mxu0 %vm287_vm7, %v1640_v63 }
 0xf34   :  { %3297 = vmatpush3.bf16.msra.mxu0 %v3640_v4  ;;  %3301 = vmatprep.subr.bf16.mxu1 %v3507_v31 }
 0xf35   :  { %3298 = vmatprep.subr.bf16.mxu0 %v3507_v31  ;;  %3099 = vmatprep.mubr.msk.f32.mxu0 %vm3508_vm5, %v3506_v24 }
 0xf36   :  { %3089 = vmatmul.mubr.msk.f32.vlgmr.msra.gmra.mrb[20].mxu1 %vm287_vm7, %v1640_v63 }
 0xf37   :  { %3303 = vmatpush3.bf16.msra.mxu1 %v3651_v8  ;;  %3110 = vmatprep.mubr.msk.f32.mxu1 %vm3508_vm5, %v3506_v24 }
 0xf38   :  { %3300 = vmatpush3.bf16.msra.mxu0 %v3660_v11  ;;  %3304 = vmatprep.subr.bf16.mxu1 %v3507_v31 }
 0xf39   :  { %3307 = vmatprep.subr.bf16.mxu0 %v3507_v31 }
 0xf3b   :  { %3306 = vmatpush3.bf16.msra.mxu1 %v3664_v12 }
 0xf3c   :  { %3313 = vmatprep.subr.bf16.mxu1 %v3507_v31 }
0x1001   :  { %v1634_v0 = vpop.f32.mrb[18].mxu1 }
0x1002   :  { %v3068_v1 = vpop.f32.mrb[19].mxu1 }
0x1006   :  { %v1709_v2 = vpop.f32.mrb[16].mxu0 }
0x1007   :  { %v1710_v3 = vadd.f32 %v1709_v2, %v1634_v0  ;;  %v3079_v5 = vpop.f32.mrb[17].mxu0 }
0x1009   :  { %v1720_v6 = vadd.f32 %v3697_v20, %v1710_v3  ;;  %v1822_v9 = vpop.f32.mrb[20].mxu1 }
0x100a   :  { %v1826_v10 = vadd.f32 %v1822_v9, %v1751_v7  ;;  %v3090_v13 = vpop.f32.mrb[21].mxu1 }
0x100b   :  { %3425 = vtanh.f32 %v1720_v6  ;;  %v2711_v16 = vmul.f32 -1.442695, %v1720_v6 }
0x100c   :  { %3427 = vtanh.f32 %v1826_v10  ;;  %v2713_v17 = vmul.f32 -1.442695, %v1826_v10 }
0x100d   :  { %3429 = vpow2.f32 %v2711_v16 }
0x100e   :  { %3431 = vpow2.f32 %v2713_v17  ;;  %v2338_v17 = vld [vmem:[%s4000_s4] sm:$0xff] }
0x1015   :  { %v3426_v14 = vpop.eup %3425 }
0x1016   :  { %v3428_v15 = vpop.eup %3427  ;;  %1730 = vrot.lane.b32.xlu0 %v3426_v14, %s3509_s8 }
0x1017   :  { %1836 = vrot.lane.b32.xlu1 %v3428_v15, %s3509_s8  ;;  %v3430_v18 = vpop.eup %3429 }
0x1018   :  { %v3432_v19 = vpop.eup %3431  ;;  %v1724_v21 = vadd.f32 1.0, %v3430_v18  ;;  %v2339_v18 = vld [vmem:[%s4000_s4 + $0x8] sm:$0xff] }
0x1019   :  { %v1830_v22 = vadd.f32 1.0, %v3432_v19  ;;  %v3326_v19 = vpack.c.bf16 %v2339_v18, %v2338_v17 }
0x101a   :  { %3433 = vrcp.f32 %v1724_v21  ;;  %v2340_v21 = vld [vmem:[%s4000_s4 + $0x10] sm:$0xff] }
0x101b   :  { %3435 = vrcp.f32 %v1830_v22  ;;  %v2341_v22 = vld [vmem:[%s4000_s4 + $0x18] sm:$0xff] }
0x1024   :  { %v3434_v23 = vpop.eup %3433 }
0x1025   :  { %v3436_v26 = vpop.eup %3435  ;;  %v1728_v30 = vmul.f32 %v3434_v23, %v3821_v52 }
0x1026   :  { %v1834_v32 = vmul.f32 %v3436_v26, %v3825_v55 }
0x1088   :  { %v1731_v25 = vpop.permute.xlu0 %1730 }
0x1089   :  { %v1837_v27 = vpop.permute.xlu1 %1836  ;;  %v1733_v28 = vmul.f32 %v3434_v23, %v1731_v25  ;;  %v3329_v25 = vpack.c.bf16 %v2341_v22, %v2340_v21 }
0x108a   :  { %v1839_v29 = vmul.f32 %v3436_v26, %v1837_v27 }
0x108b   :  { %1735 = vrot.lane.b32.xlu0 %v1733_v28, %s3510_s9 }
0x108c   :  { %1841 = vrot.lane.b32.xlu1 %v1839_v29, %s3510_s9 }
0x10fd   :  { %v1736_v33 = vpop.permute.xlu0 %1735 }
0x10fe   :  { %v1842_v34 = vpop.permute.xlu1 %1841  ;;  %v3861_v36 = vadd.f32 %v1736_v33, %v1728_v30 }
0x10ff   :  { %v3863_v37 = vadd.f32 %v1842_v34, %v1834_v32  ;;  %v2337_v34 = vld [vmem:[#allocation2 + $0x1c] sm:$0xf] }
0x1100   :  { %3437 = vtanh.f32 %v3861_v36 }
0x1101   :  { %3439 = vtanh.f32 %v3863_v37 }
0x110a   :  { %v3438_v38 = vpop.eup %3437 }
0x110b   :  { %v3440_v39 = vpop.eup %3439  ;;  %1741 = vrot.lane.b32.xlu0 %v3438_v38, %s3509_s8 }
0x110c   :  { %1847 = vrot.lane.b32.xlu1 %v3440_v39, %s3509_s8 }
0x117d   :  { %v1742_v41 = vpop.permute.xlu0 %1741 }
0x117e   :  { %v1848_v42 = vpop.permute.xlu1 %1847  ;;  %v1744_v43 = vmul.f32 %v3434_v23, %v1742_v41 }
0x117f   :  { %v1850_v44 = vmul.f32 %v3436_v26, %v1848_v42 }
0x1180   :  { %1746 = vrot.lane.b32.xlu0 %v1744_v43, %s3510_s9 }
0x1181   :  { %1932 = vrot.lane.b32.xlu1 %v1850_v44, %s3510_s9 }
0x11f2   :  { %v1747_v45 = vpop.permute.xlu0 %1746 }
0x11f3   :  { %v1933_v46 = vpop.permute.xlu1 %1932  ;;  %1750 = vst.msk [vmem:[#allocation3 + $0x10] sm:$0xf] %vm577_vm8, %v1747_v45  ;;  %3100 = vmatmul.mubr.msk.f32.vlgmr.msra.gmra.mrb[18].mxu0 %vm287_vm7, %v1747_v45 }
0x11f4   :  { %3111 = vmatmul.mubr.msk.f32.vlgmr.msra.gmra.mrb[22].mxu1 %vm287_vm7, %v1933_v46  ;;  %3309 = vmatpush3.bf16.msra.mxu0 %v3604_v35 }
0x11f5   :  { %3310 = vmatprep.subr.bf16.mxu0 %v3507_v31  ;;  %3121 = vmatprep.mubr.msk.f32.mxu0 %vm3508_vm5, %v3506_v24 }
0x11f6   :  { %3315 = vmatpush3.bf16.msra.mxu1 %v3640_v4  ;;  %3132 = vmatprep.mubr.msk.f32.mxu1 %vm3508_vm5, %v3506_v24 }
0x11f7   :  { %3316 = vmatprep.subr.bf16.mxu1 %v3507_v31 }
0x11f8   :  { %3312 = vmatpush3.bf16.msra.mxu0 %v3613_v40 }
0x11f9   :  { %3319 = vmatprep.subr.bf16.mxu0 %v3507_v31 }
0x11fa   :  { %3318 = vmatpush3.bf16.msra.mxu1 %v3660_v11 }
0x11fb   :  { %3122 = vmatmul.mubr.msk.f32.vlgmr.msra.gmra.mrb[20].mxu0 %vm287_vm7, %v1933_v46  ;;  %3325 = vmatprep.subr.bf16.mxu1 %v3507_v31 }
0x11fc   :  { %3321 = vmatpush3.bf16.msra.mxu0 %v3651_v8  ;;  %3143 = vmatprep.mubr.msk.f32.mxu0 %vm3508_vm5, %v3506_v24 }
0x11fd   :  { %3322 = vmatprep.subr.bf16.mxu0 %v3507_v31 }
0x1200   :  { %3324 = vmatpush3.bf16.msra.mxu0 %v3664_v12 }
0x1201   :  { %3331 = vmatprep.subr.bf16.mxu0 %v3507_v31 }
0x12c6   :  { %v1927_v35 = vpop.f32.mrb[18].mxu0 }
0x12c7   :  { %v2002_v40 = vpop.f32.mrb[22].mxu1  ;;  %v3101_v4 = vpop.f32.mrb[19].mxu0 }
0x12c8   :  { %v2003_v47 = vadd.f32 %v2002_v40, %v1927_v35  ;;  %v3112_v11 = vpop.f32.mrb[23].mxu1 }
0x12ca   :  { %v2013_v48 = vadd.f32 %v3697_v20, %v2003_v47 }
0x12cc   :  { %3441 = vtanh.f32 %v2013_v48  ;;  %v2722_v12 = vmul.f32 -1.442695, %v2013_v48 }
0x12ce   :  { %v2115_v50 = vpop.f32.mrb[20].mxu0 }
0x12cf   :  { %v2119_v8 = vadd.f32 %v2115_v50, %v2044_v49  ;;  %v3123_v51 = vpop.f32.mrb[21].mxu0 }
0x12d1   :  { %3443 = vtanh.f32 %v2119_v8  ;;  %v2724_v54 = vmul.f32 -1.442695, %v2119_v8 }
0x12d2   :  { %3445 = vpow2.f32 %v2722_v12  ;;  %v2737_v12 = vld [vmem:[%s4000_s4 + $0x28] sm:$0xff] }
0x12d3   :  { %3447 = vpow2.f32 %v2724_v54  ;;  %v2437_v54 = vld [vmem:[%s3999_s3] sm:$0xff] }
0x12d6   :  { %v3442_v52 = vpop.eup %3441 }
0x12d7   :  { %2023 = vrot.lane.b32.xlu0 %v3442_v52, %s3509_s8 }
0x12db   :  { %v3444_v53 = vpop.eup %3443 }
0x12dc   :  { %2129 = vrot.lane.b32.xlu1 %v3444_v53, %s3509_s8  ;;  %v3446_v55 = vpop.eup %3445  ;;  %v2736_v53 = vld [vmem:[%s4000_s4 + $0x20] sm:$0xff] }
0x12dd   :  { %v2017_v56 = vadd.f32 1.0, %v3446_v55  ;;  %v3448_v57 = vpop.eup %3447  ;;  %v3332_v55 = vpack.c.bf16 %v2737_v12, %v2736_v53 }
0x12de   :  { %v2123_v58 = vadd.f32 1.0, %v3448_v57  ;;  %v2738_v57 = vld [vmem:[%s4000_s4 + $0x30] sm:$0xff] }
0x12df   :  { %3449 = vrcp.f32 %v2017_v56  ;;  %v2438_v56 = vld [vmem:[%s3999_s3 + $0x8] sm:$0xff] }
0x12e0   :  { %3451 = vrcp.f32 %v2123_v58  ;;  %v2739_v58 = vld [vmem:[%s4000_s4 + $0x38] sm:$0xff] }
0x12e9   :  { %v3450_v59 = vpop.eup %3449 }
0x12ea   :  { %v3452_v62 = vpop.eup %3451  ;;  %v2021_v1 = vmul.f32 %v3450_v59, %v3861_v36 }
0x12eb   :  { %v2127_v5 = vmul.f32 %v3452_v62, %v3863_v37 }
0x1349   :  { %v2024_v60 = vpop.permute.xlu0 %2023 }
0x134a   :  { %v2026_v61 = vmul.f32 %v3450_v59, %v2024_v60  ;;  %v2439_v60 = vld [vmem:[%s3999_s3 + $0x10] sm:$0xff] }
0x134c   :  { %2028 = vrot.lane.b32.xlu0 %v2026_v61, %s3510_s9  ;;  %v2440_v61 = vld [vmem:[%s3999_s3 + $0x18] sm:$0xff] }
0x134e   :  { %v2130_v63 = vpop.permute.xlu1 %2129 }
0x134f   :  { %v2132_v0 = vmul.f32 %v3452_v62, %v2130_v63  ;;  %v3341_v63 = vpack.c.bf16 %v2440_v61, %v2439_v60 }
0x1351   :  { %2134 = vrot.lane.b32.xlu1 %v2132_v0, %s3510_s9 }
0x13be   :  { %v2029_v2 = vpop.permute.xlu0 %2028 }
0x13bf   :  { %v3899_v3 = vadd.f32 %v2029_v2, %v2021_v1 }
0x13c1   :  { %3453 = vtanh.f32 %v3899_v3 }
0x13c3   :  { %v2135_v6 = vpop.permute.xlu1 %2134 }
0x13c4   :  { %v3903_v7 = vadd.f32 %v2135_v6, %v2127_v5 }
0x13c6   :  { %3455 = vtanh.f32 %v3903_v7 }
0x13cb   :  { %v3454_v9 = vpop.eup %3453 }
0x13cc   :  { %2034 = vrot.lane.b32.xlu0 %v3454_v9, %s3509_s8 }
0x13d0   :  { %v3456_v10 = vpop.eup %3455 }
0x13d1   :  { %2140 = vrot.lane.b32.xlu1 %v3456_v10, %s3509_s8 }
0x143e   :  { %v2035_v13 = vpop.permute.xlu0 %2034 }
0x143f   :  { %v2037_v14 = vmul.f32 %v3450_v59, %v2035_v13  ;;  %v3338_v59 = vpack.c.bf16 %v2438_v56, %v2437_v54  ;;  %v2743_v13 = vld [vmem:[%s4001_s5 + $0x1] ss:$0 sm:$0xff]  ;;  %s3511_s5 = smov [#allocation3]  }
0x1440   :  { %s2635_s24 = sshll.u32 %s3511_s5, 4  ;;  %s2636_s24 = int_to_ptr.vmem [resolvable:$true] %s2635_s24 }
0x1441   :  { %2039 = vrot.lane.b32.xlu0 %v2037_v14, %s3510_s9  ;;  %s3481_s25 = scalar_lea.vmem %s2636_s24, 512  ;;  %p3486_p1 = scmp.lt.s32.totalorder %s2636_s24, %s2636_s24 }
0x1442   :  { %p3482_p0 = scmp.ne.s32.totalorder %s2636_s24, %s3481_s25  ;;  %p3487_p2 = scmp.lt.s32.totalorder %s3481_s25, %s3481_s25 }
0x1443   :  { %v2141_v15 = vpop.permute.xlu1 %2140 }
0x1444   :  { %v2143_v16 = vmul.f32 %v3452_v62, %v2141_v15  ;;  %v3335_v62 = vpack.c.bf16 %v2739_v58, %v2738_v57  ;;  %p3488_p3 = por %p3487_p2, %p3486_p1 }
0x1446   :  { %2225 = vrot.lane.b32.xlu1 %v2143_v16, %s3510_s9  ;;  %p3489_p4 = pnand %p3488_p3, %p3482_p0 }
0x14b3   :  { %v2040_v23 = vpop.permute.xlu0 %2039 }
0x14b4   :  { %2043 = vst.msk [vmem:[#allocation3 + $0x14] sm:$0xf] %vm577_vm8, %v2040_v23  ;;  %3133 = vmatmul.mubr.msk.f32.vlgmr.msra.gmra.mrb[24].mxu1 %vm287_vm7, %v2040_v23 }
0x14b5   :  { %3327 = vmatpush3.bf16.msra.mxu1 %v3326_v19  ;;  %3154 = vmatprep.mubr.msk.f32.mxu1 %vm3508_vm5, %v3506_v24 }
0x14b6   :  { %3328 = vmatprep.subr.bf16.mxu1 %v3507_v31 }
0x14b8   :  { %v2226_v26 = vpop.permute.xlu1 %2225 }
0x14b9   :  { %3330 = vmatpush3.bf16.msra.mxu1 %v3329_v25  ;;  %3144 = vmatmul.mubr.msk.f32.vlgmr.msra.gmra.mrb[22].mxu0 %vm287_vm7, %v2226_v26 }
0x14ba   :  { %3337 = vmatprep.subr.bf16.mxu1 %v3507_v31  ;;  %3165 = vmatprep.mubr.msk.f32.mxu0 %vm3508_vm5, %v3506_v24 }
0x14bb   :  { %3333 = vmatpush3.bf16.msra.mxu0 %v3332_v55 }
0x14bc   :  { %3155 = vmatmul.mubr.msk.f32.vlgmr.msra.gmra.mrb[26].mxu1 %vm287_vm7, %v2226_v26  ;;  %3334 = vmatprep.subr.bf16.mxu0 %v3507_v31 }
0x14bd   :  { %3176 = vmatprep.mubr.msk.f32.mxu1 %vm3508_vm5, %v3506_v24  ;;  %3339 = vmatpush3.bf16.msra.mxu1 %v3338_v59 }
0x14be   :  { %3340 = vmatprep.subr.bf16.mxu1 %v3507_v31 }
0x14bf   :  { %3336 = vmatpush3.bf16.msra.mxu0 %v3335_v62 }
0x14c1   :  { %3342 = vmatpush3.bf16.msra.mxu1 %v3341_v63 }
0x1587   :  { %v2220_v27 = vpop.f32.mrb[24].mxu1 }
0x1588   :  { %v3134_v28 = vpop.f32.mrb[25].mxu1 }
0x158c   :  { %v2295_v29 = vpop.f32.mrb[22].mxu0 }
0x158d   :  { %v2296_v30 = vadd.f32 %v2295_v29, %v2220_v27  ;;  %v3145_v32 = vpop.f32.mrb[23].mxu0 }
0x158f   :  { %v2306_v33 = vadd.f32 %v3697_v20, %v2296_v30  ;;  %v2408_v36 = vpop.f32.mrb[26].mxu1 }
0x1590   :  { %v2412_v37 = vadd.f32 %v2408_v36, %v2337_v34  ;;  %v3156_v38 = vpop.f32.mrb[27].mxu1 }
0x1591   :  { %3457 = vtanh.f32 %v2306_v33  ;;  %v2733_v24 = vmul.f32 -1.442695, %v2306_v33 }
0x1592   :  { %3459 = vtanh.f32 %v2412_v37  ;;  %v2735_v42 = vmul.f32 -1.442695, %v2412_v37 }
0x1593   :  { %3461 = vpow2.f32 %v2733_v24 }
0x1594   :  { %3463 = vpow2.f32 %v2735_v42 }
0x159b   :  { %v3458_v39 = vpop.eup %3457 }
0x159c   :  { %v3460_v41 = vpop.eup %3459  ;;  %2316 = vrot.lane.b32.xlu0 %v3458_v39, %s3509_s8 }
0x159d   :  { %2422 = vrot.lane.b32.xlu1 %v3460_v41, %s3509_s8  ;;  %v3462_v43 = vpop.eup %3461 }
0x159e   :  { %v3464_v44 = vpop.eup %3463  ;;  %v2310_v45 = vadd.f32 1.0, %v3462_v43 }
0x159f   :  { %v2416_v20 = vadd.f32 1.0, %v3464_v44 }
0x15a0   :  { %3465 = vrcp.f32 %v2310_v45 }
0x15a1   :  { %3467 = vrcp.f32 %v2416_v20 }
0x15aa   :  { %v3466_v46 = vpop.eup %3465 }
0x15ab   :  { %v3468_v40 = vpop.eup %3467  ;;  %v2314_v48 = vmul.f32 %v3466_v46, %v3899_v3 }
0x15ac   :  { %v2420_v49 = vmul.f32 %v3468_v40, %v3903_v7 }
0x160e   :  { %v2317_v35 = vpop.permute.xlu0 %2316 }
0x160f   :  { %v2423_v4 = vpop.permute.xlu1 %2422  ;;  %v2319_v47 = vmul.f32 %v3466_v46, %v2317_v35 }
0x1610   :  { %v2425_v11 = vmul.f32 %v3468_v40, %v2423_v4 }
0x1611   :  { %2321 = vrot.lane.b32.xlu0 %v2319_v47, %s3510_s9 }
0x1612   :  { %2427 = vrot.lane.b32.xlu1 %v2425_v11, %s3510_s9 }
0x1683   :  { %v2322_v50 = vpop.permute.xlu0 %2321 }
0x1684   :  { %v2428_v8 = vpop.permute.xlu1 %2427  ;;  %v2324_v51 = vadd.f32 %v2322_v50, %v2314_v48 }
0x1685   :  { %v2430_v52 = vadd.f32 %v2428_v8, %v2420_v49 }
0x1686   :  { %3469 = vtanh.f32 %v2324_v51 }
0x1687   :  { %3471 = vtanh.f32 %v2430_v52 }
0x1690   :  { %v3470_v0 = vpop.eup %3469 }
0x1691   :  { %v3472_v1 = vpop.eup %3471  ;;  %2327 = vrot.lane.b32.xlu0 %v3470_v0, %s3509_s8 }
0x1692   :  { %2433 = vrot.lane.b32.xlu1 %v3472_v1, %s3509_s8 }
0x1703   :  { %v2328_v2 = vpop.permute.xlu0 %2327 }
0x1704   :  { %v2434_v3 = vpop.permute.xlu1 %2433  ;;  %v2330_v5 = vmul.f32 %v3466_v46, %v2328_v2 }
0x1705   :  { %v2436_v6 = vmul.f32 %v3468_v40, %v2434_v3 }
0x1706   :  { %2332 = vrot.lane.b32.xlu0 %v2330_v5, %s3510_s9 }
0x1707   :  { %2518 = vrot.lane.b32.xlu1 %v2436_v6, %s3510_s9 }
0x1778   :  { %v2333_v7 = vpop.permute.xlu0 %2332 }
0x1779   :  { %v2519_v9 = vpop.permute.xlu1 %2518  ;;  %2336 = vst.msk [vmem:[#allocation3 + $0x18] sm:$0xf] %vm577_vm8, %v2333_v7  ;;  %3166 = vmatmul.mubr.msk.f32.vlgmr.msra.gmra.mrb[24].mxu0 %vm287_vm7, %v2333_v7 }
0x177a   :  { %3177 = vmatmul.mubr.msk.f32.vlgmr.msra.gmra.mrb[28].mxu1 %vm287_vm7, %v2519_v9 }
0x184c   :  { %v2513_v31 = vpop.f32.mrb[24].mxu0 }
0x184d   :  { %v2588_v10 = vpop.f32.mrb[28].mxu1  ;;  %v3167_v14 = vpop.f32.mrb[25].mxu0 }
0x184e   :  { %v2589_v15 = vadd.f32 %v2588_v10, %v2513_v31  ;;  %v3178_v16 = vpop.f32.mrb[29].mxu1 }
0x1850   :  { %v2599_v17 = vadd.f32 %v2743_v13, %v2589_v15 }
0x1852   :  { %3473 = vtanh.f32 %v2599_v17  ;;  %v2744_v19 = vmul.f32 -1.442695, %v2599_v17 }
0x1854   :  { %3475 = vpow2.f32 %v2744_v19 }
0x185c   :  { %v3474_v18 = vpop.eup %3473 }
0x185d   :  { %2609 = vrot.lane.b32.xlu0 %v3474_v18, %s3509_s8 }
0x185e   :  { %v3476_v21 = vpop.eup %3475 }
0x185f   :  { %v2603_v22 = vadd.f32 1.0, %v3476_v21 }
0x1861   :  { %3477 = vrcp.f32 %v2603_v22 }
0x186b   :  { %v3478_v23 = vpop.eup %3477 }
0x186c   :  { %v2607_v27 = vmul.f32 %v3478_v23, %v2324_v51 }
0x18cf   :  { %v2610_v25 = vpop.permute.xlu0 %2609 }
0x18d0   :  { %v2612_v26 = vmul.f32 %v3478_v23, %v2610_v25 }
0x18d2   :  { %2614 = vrot.lane.b32.xlu1 %v2612_v26, %s3510_s9 }
0x1944   :  { %v2615_v28 = vpop.permute.xlu1 %2614 }
0x1945   :  { %v2617_v29 = vadd.f32 %v2615_v28, %v2607_v27 }
0x1947   :  { %3479 = vtanh.f32 %v2617_v29 }
0x1951   :  { %v3480_v30 = vpop.eup %3479 }
0x1952   :  { %2620 = vrot.lane.b32.xlu0 %v3480_v30, %s3509_s8 }
0x19c4   :  { %v2621_v32 = vpop.permute.xlu0 %2620 }
0x19c5   :  { %v2623_v33 = vmul.f32 %v3478_v23, %v2621_v32 }
0x19c7   :  { %2625 = vrot.lane.b32.xlu1 %v2623_v33, %s3510_s9 }
0x1a39   :  { %v2626_v34 = vpop.permute.xlu1 %2625 }
0x1a3a   :  { %2629 = vst.msk [vmem:[#allocation3 + $0x1c] sm:$0xf] %vm577_vm8, %v2626_v34 }
0x1a3b   :  { %3492 = shalt.err (!%p3489_p4)
}
0x1a3c   :  { %s3493_s28 = scalar_lea.hbm %s4002_s6, 512 }
0x1a3d   :  { %p3494_p5 = scmp.ne.s32.totalorder %s4002_s6, %s3493_s28  ;;  %p3497_p6 = scmp.lt.u32.totalorder %s3493_s28, %s4002_s6 }
0x1a3f   :  { %p3499_p7 = pnand %p3497_p6, %p3494_p5 }
0x1a41   :  { %3502 = shalt.err (!%p3499_p7)
}
0x1a42   :  { %s3512_s10 = smov 4  }
0x1a43   :  { %2641 = dma.vmem_to_hbm [thread:$0]  %s2636_s24, 512, %s4002_s6, [#allocation4], %s3509_s8, %s3509_s8, %s3512_s10  }
0x1a44   :  { %3503 = dma.done.wait [#allocation4], 512  }
0x1a45   :  { %3504 = vsyncadd [#allocation4], 4294966784 }
0x1a46   :  { %2645 = vsyncpa [#allocation4], 1 }

</bundles_post_ra>
